<compile_context>
chip_gen: v7x
topology: tpu7x:2x2x1
jax: 0.10.0
libtpu: 0.0.40
codegen_flags: <defaults>
</compile_context>

<pallas_src>
import functools

import jax
import jax.numpy as jnp
from jax import lax
from jax.experimental import pallas as pl
from jax.experimental.pallas import tpu as pltpu


# --------------------------------------------------------------------------- #
# Conv2d(kernel=3, stride=1, VALID) + ReLU: tap-wise shift-matmul kernel
# --------------------------------------------------------------------------- #
def _conv3x3_relu_kernel(x_ref, w_ref, b_ref, o_ref, *, row_w, kh, kw):
    """One image per grid step.

    x_ref: (1, Cin, S_pad)        bf16, spatial flattened row-major with stored
                                  row width `row_w`, plus (kw-1) trailing zeros.
    w_ref: (kh*kw, Cout, Cin)     bf16, one (Cout, Cin) matrix per kernel tap.
    b_ref: (Cout, 1)              f32.
    o_ref: (1, Cout, Hout*row_w)  f32, full-stored-width rows (the last kw-1
                                  columns of each row are don't-care).
    """
    cout, s_out = o_ref.shape[1], o_ref.shape[2]
    cin = x_ref.shape[1]

    acc = jnp.zeros((cout, s_out), jnp.float32)
    for r in range(kh):
        for c in range(kw):
            d = r * row_w + c                      # static lane offset of this tap
            xs = x_ref[0, :, d:d + s_out]          # (Cin, S_out) bf16
            wt = w_ref[r * kw + c]                 # (Cout, Cin) bf16
            if cin == 1:
                # K=1 contraction: rank-1 update on the VPU instead of a badly
                # underfilled MXU matmul.
                acc = acc + wt.astype(jnp.float32) * xs.astype(jnp.float32)
            else:
                acc = acc + jnp.dot(wt, xs, preferred_element_type=jnp.float32)

    acc = acc + b_ref[...]                         # (Cout, 1) broadcast over lanes
    o_ref[0] = jnp.maximum(acc, 0.0).astype(o_ref.dtype)


def conv3x3_relu(x, weight, bias):
    """ReLU(Conv2d(x, weight, bias; kernel=3, stride=1, no padding)).

    x:      (N, Cin, H, W) f32 NCHW.  Columns beyond the caller's "true" width
            may be don't-care; all rows are valid.
    weight: (Cout, Cin, 3, 3) f32 (PyTorch OIHW).
    bias:   (Cout,) f32.
    Returns (N, Cout, H-2, W) f32 where only the first (true_w - 2) columns of
    each row are valid ("full stored width" layout: every in-kernel slice stays
    static and lane-dense).
    """
    n, cin, h, w = x.shape
    cout, cin_w, KH, KW = weight.shape
    assert cin_w == cin
    hout = h - (KH - 1)
    s_out = hout * w
    s_pad = h * w + (KW - 1)

    # Flatten spatial (contiguous -> free) + tiny zero tail so the last tap's
    # shifted slice stays in bounds; cast matmul operands to bf16.
    x_flat = jnp.pad(x.reshape(n, cin, h * w), ((0, 0), (0, 0), (0, KW - 1)))
    x_flat = x_flat.astype(jnp.bfloat16)
    # (Cout, Cin, KH, KW) -> (KH*KW, Cout, Cin): one small matrix per tap.
    w_taps = jnp.transpose(weight, (2, 3, 0, 1)).reshape(KH * KW, cout, cin)
    w_taps = w_taps.astype(jnp.bfloat16)
    b2 = bias.reshape(cout, 1).astype(jnp.float32)

    kernel = functools.partial(_conv3x3_relu_kernel, row_w=w, kh=KH, kw=KW)

    out = pl.pallas_call(
        kernel,
        out_shape=jax.ShapeDtypeStruct((n, cout, s_out), jnp.float32),
        grid=(n,),
        in_specs=[
            pl.BlockSpec((1, cin, s_pad), lambda i: (i, 0, 0)),       # image i
            pl.BlockSpec((KH * KW, cout, cin), lambda i: (0, 0, 0)),  # resident weights
            pl.BlockSpec((cout, 1), lambda i: (0, 0)),                # resident bias
        ],
        out_specs=pl.BlockSpec((1, cout, s_out), lambda i: (i, 0, 0)),
        compiler_params=pltpu.CompilerParams(
            dimension_semantics=("parallel",)),     # batch across TCs on v7x
    )(x_flat, w_taps, b2)

    return out.reshape(n, cout, hout, w)


# --------------------------------------------------------------------------- #
# MaxPool2d(kernel=3, stride=3)
# --------------------------------------------------------------------------- #
# TODO(synk): pooling is left to XLA's reduce_window (tiny, memory-bound glue);
# it could be fused into the preceding conv kernel's epilogue.
def maxpool3x3(x):
    return lax.reduce_window(x, -jnp.inf, lax.max,
                             window_dimensions=(1, 1, 3, 3),
                             window_strides=(1, 1, 3, 3),
                             padding="VALID")


# --------------------------------------------------------------------------- #
# Head: Linear(96->50) -> Linear(50->10), fused in one kernel
# --------------------------------------------------------------------------- #
def _head_kernel(x_ref, w1_ref, b1_ref, w2_ref, b2_ref, o_ref):
    h = jnp.dot(x_ref[...], w1_ref[...],
                preferred_element_type=jnp.float32) + b1_ref[...]
    y = jnp.dot(h, w2_ref[...],
                preferred_element_type=jnp.float32) + b2_ref[...]
    o_ref[...] = y.astype(o_ref.dtype)


def head(x, w1, b1, w2, b2):
    n, in_dim = x.shape
    hid = w1.shape[1]
    out_dim = w2.shape[1]
    return pl.pallas_call(
        _head_kernel,
        out_shape=jax.ShapeDtypeStruct((n, out_dim), jnp.float32),
        grid=(1,),
        in_specs=[
            pl.BlockSpec((n, in_dim), lambda i: (0, 0)),
            pl.BlockSpec((in_dim, hid), lambda i: (0, 0)),
            pl.BlockSpec((1, hid), lambda i: (0, 0)),
            pl.BlockSpec((hid, out_dim), lambda i: (0, 0)),
            pl.BlockSpec((1, out_dim), lambda i: (0, 0)),
        ],
        out_specs=pl.BlockSpec((n, out_dim), lambda i: (0, 0)),
    )(x, w1, b1.reshape(1, -1), w2, b2.reshape(1, -1))


# --------------------------------------------------------------------------- #
# Full Classifier forward
# --------------------------------------------------------------------------- #
def classifier_forward(x, params):
    (w1, b1), (w2, b2), (w3, b3), (wh1, bh1), (wh2, bh2) = params

    tw = x.shape[3]                          # tracker of the valid (true) width
    a = conv3x3_relu(x, w1, b1); tw -= 2     # (N,12,26,28), valid width 26
    a = conv3x3_relu(a, w2, b2); tw -= 2     # (N,12,24,28), valid width 24
    a = maxpool3x3(a[..., :tw]); tw //= 3    # (N,12, 8, 8)
    a = conv3x3_relu(a, w3, b3); tw -= 2     # (N,24, 6, 8), valid width 6
    a = maxpool3x3(a[..., :tw]); tw //= 3    # (N,24, 2, 2)
    a = a.reshape(a.shape[0], -1)            # (N,96)  == torch flatten(start_dim=1)
    return head(a, wh1, bh1, wh2, bh2)       # (N,10)


# --------------------------------------------------------------------------- #
# Pure-XLA reference (bf16-rounds conv operands at the same points as the
# Pallas path so the comparison isolates kernel bugs, not bf16 quantization).
# --------------------------------------------------------------------------- #
def classifier_reference(x, params):
    (w1, b1), (w2, b2), (w3, b3), (wh1, bh1), (wh2, bh2) = params

    def conv_relu(h, w, b):
        hb = h.astype(jnp.bfloat16).astype(jnp.float32)
        wb = w.astype(jnp.bfloat16).astype(jnp.float32)
        y = lax.conv_general_dilated(
            hb, wb, window_strides=(1, 1), padding="VALID",
            dimension_numbers=("NCHW", "OIHW", "NCHW"))
        return jnp.maximum(y + b[None, :, None, None], 0.0)

    a = conv_relu(x, w1, b1)
    a = conv_relu(a, w2, b2)
    a = maxpool3x3(a)
    a = conv_relu(a, w3, b3)
    a = maxpool3x3(a)
    a = a.reshape(a.shape[0], -1)
    a = a @ wh1 + bh1
    return a @ wh2 + bh2


if __name__ == "__main__":
    key = jax.random.PRNGKey(0)
    ks = jax.random.split(key, 11)

    N = 2
    # 28x28x1 input is what Head(96, 10) implies: 24 channels * 2 * 2 = 96.
    x = jax.random.normal(ks[0], (N, 1, 28, 28), jnp.float32)

    params = (
        (jax.random.normal(ks[1], (12, 1, 3, 3), jnp.float32) * 0.30,
         jax.random.normal(ks[2], (12,), jnp.float32) * 0.10),
        (jax.random.normal(ks[3], (12, 12, 3, 3), jnp.float32) * 0.10,
         jax.random.normal(ks[4], (12,), jnp.float32) * 0.10),
        (jax.random.normal(ks[5], (24, 12, 3, 3), jnp.float32) * 0.10,
         jax.random.normal(ks[6], (24,), jnp.float32) * 0.10),
        (jax.random.normal(ks[7], (96, 50), jnp.float32) * 0.10,
         jax.random.normal(ks[8], (50,), jnp.float32) * 0.10),
        (jax.random.normal(ks[9], (50, 10), jnp.float32) * 0.15,
         jax.random.normal(ks[10], (10,), jnp.float32) * 0.10),
    )

    fwd = jax.jit(classifier_forward)
    y = jax.block_until_ready(fwd(x, params))

    ref = classifier_reference(x, params)

    assert y.shape == (N, 10), y.shape
    assert bool(jnp.all(jnp.isfinite(y)))
    assert jnp.allclose(y, ref, rtol=2e-2, atol=2e-2), \
        float(jnp.max(jnp.abs(y - ref)))
    print("KERNEL_OK")
</pallas_src>

<mosaic_0001>
module attributes {stable_mosaic.version = 11 : i64} {
  func.func @_conv3x3_relu_kernel(%arg0: i32, %arg1: memref<1x1x786xbf16, #tpu.memory_space<vmem>>, %arg2: memref<9x12x1xbf16, #tpu.memory_space<vmem>>, %arg3: memref<12x1xf32, #tpu.memory_space<vmem>>, %arg4: memref<1x12x728xf32, #tpu.memory_space<vmem>>) attributes {dimension_semantics = [#tpu.dimension_semantics<parallel>], iteration_bounds = array<i64: 2>, scalar_prefetch = 0 : i64, scratch_operands = 0 : i64, tpu.core_type = #tpu.core_type<tc>, window_params = [{transform_indices = @transform_0, window_bounds = array<i64: 1, 1, 786>}, {pipeline_mode = #tpu.pipeline_mode<synchronous>, transform_indices = @transform_1, window_bounds = array<i64: 9, 12, 1>}, {pipeline_mode = #tpu.pipeline_mode<synchronous>, transform_indices = @transform_2, window_bounds = array<i64: 12, 1>}, {transform_indices = @transform_3, window_bounds = array<i64: 1, 12, 728>}]} {
    %cst = arith.constant 0.000000e+00 : f32
    %0 = vector.broadcast %cst : f32 to vector<12x728xf32>
    %c0 = arith.constant 0 : index
    %c0_0 = arith.constant 0 : index
    %c0_1 = arith.constant 0 : index
    %1 = vector.load %arg1[%c0, %c0_0, %c0_1] : memref<1x1x786xbf16, #tpu.memory_space<vmem>>, vector<1x1x728xbf16>
    %2 = vector.shape_cast %1 : vector<1x1x728xbf16> to vector<1x728xbf16>
    %c0_2 = arith.constant 0 : index
    %c0_3 = arith.constant 0 : index
    %c0_4 = arith.constant 0 : index
    %3 = vector.load %arg2[%c0_2, %c0_3, %c0_4] : memref<9x12x1xbf16, #tpu.memory_space<vmem>>, vector<1x12x1xbf16>
    %4 = vector.shape_cast %3 : vector<1x12x1xbf16> to vector<12x1xbf16>
    %5 = arith.extf %4 : vector<12x1xbf16> to vector<12x1xf32>
    %6 = arith.extf %2 : vector<1x728xbf16> to vector<1x728xf32>
    %7 = vector.broadcast %5 : vector<12x1xf32> to vector<12x728xf32>
    %8 = vector.broadcast %6 : vector<1x728xf32> to vector<12x728xf32>
    %9 = arith.mulf %7, %8 : vector<12x728xf32>
    %10 = arith.addf %0, %9 : vector<12x728xf32>
    %c0_5 = arith.constant 0 : index
    %c0_6 = arith.constant 0 : index
    %c1 = arith.constant 1 : index
    %11 = vector.load %arg1[%c0_5, %c0_6, %c1] : memref<1x1x786xbf16, #tpu.memory_space<vmem>>, vector<1x1x728xbf16>
    %12 = vector.shape_cast %11 : vector<1x1x728xbf16> to vector<1x728xbf16>
    %c1_7 = arith.constant 1 : index
    %c0_8 = arith.constant 0 : index
    %c0_9 = arith.constant 0 : index
    %13 = vector.load %arg2[%c1_7, %c0_8, %c0_9] : memref<9x12x1xbf16, #tpu.memory_space<vmem>>, vector<1x12x1xbf16>
    %14 = vector.shape_cast %13 : vector<1x12x1xbf16> to vector<12x1xbf16>
    %15 = arith.extf %14 : vector<12x1xbf16> to vector<12x1xf32>
    %16 = arith.extf %12 : vector<1x728xbf16> to vector<1x728xf32>
    %17 = vector.broadcast %15 : vector<12x1xf32> to vector<12x728xf32>
    %18 = vector.broadcast %16 : vector<1x728xf32> to vector<12x728xf32>
    %19 = arith.mulf %17, %18 : vector<12x728xf32>
    %20 = arith.addf %10, %19 : vector<12x728xf32>
    %c0_10 = arith.constant 0 : index
    %c0_11 = arith.constant 0 : index
    %c2 = arith.constant 2 : index
    %21 = vector.load %arg1[%c0_10, %c0_11, %c2] : memref<1x1x786xbf16, #tpu.memory_space<vmem>>, vector<1x1x728xbf16>
    %22 = vector.shape_cast %21 : vector<1x1x728xbf16> to vector<1x728xbf16>
    %c2_12 = arith.constant 2 : index
    %c0_13 = arith.constant 0 : index
    %c0_14 = arith.constant 0 : index
    %23 = vector.load %arg2[%c2_12, %c0_13, %c0_14] : memref<9x12x1xbf16, #tpu.memory_space<vmem>>, vector<1x12x1xbf16>
    %24 = vector.shape_cast %23 : vector<1x12x1xbf16> to vector<12x1xbf16>
    %25 = arith.extf %24 : vector<12x1xbf16> to vector<12x1xf32>
    %26 = arith.extf %22 : vector<1x728xbf16> to vector<1x728xf32>
    %27 = vector.broadcast %25 : vector<12x1xf32> to vector<12x728xf32>
    %28 = vector.broadcast %26 : vector<1x728xf32> to vector<12x728xf32>
    %29 = arith.mulf %27, %28 : vector<12x728xf32>
    %30 = arith.addf %20, %29 : vector<12x728xf32>
    %c0_15 = arith.constant 0 : index
    %c0_16 = arith.constant 0 : index
    %c28 = arith.constant 28 : index
    %31 = vector.load %arg1[%c0_15, %c0_16, %c28] : memref<1x1x786xbf16, #tpu.memory_space<vmem>>, vector<1x1x728xbf16>
    %32 = vector.shape_cast %31 : vector<1x1x728xbf16> to vector<1x728xbf16>
    %c3 = arith.constant 3 : index
    %c0_17 = arith.constant 0 : index
    %c0_18 = arith.constant 0 : index
    %33 = vector.load %arg2[%c3, %c0_17, %c0_18] : memref<9x12x1xbf16, #tpu.memory_space<vmem>>, vector<1x12x1xbf16>
    %34 = vector.shape_cast %33 : vector<1x12x1xbf16> to vector<12x1xbf16>
    %35 = arith.extf %34 : vector<12x1xbf16> to vector<12x1xf32>
    %36 = arith.extf %32 : vector<1x728xbf16> to vector<1x728xf32>
    %37 = vector.broadcast %35 : vector<12x1xf32> to vector<12x728xf32>
    %38 = vector.broadcast %36 : vector<1x728xf32> to vector<12x728xf32>
    %39 = arith.mulf %37, %38 : vector<12x728xf32>
    %40 = arith.addf %30, %39 : vector<12x728xf32>
    %c0_19 = arith.constant 0 : index
    %c0_20 = arith.constant 0 : index
    %c29 = arith.constant 29 : index
    %41 = vector.load %arg1[%c0_19, %c0_20, %c29] : memref<1x1x786xbf16, #tpu.memory_space<vmem>>, vector<1x1x728xbf16>
    %42 = vector.shape_cast %41 : vector<1x1x728xbf16> to vector<1x728xbf16>
    %c4 = arith.constant 4 : index
    %c0_21 = arith.constant 0 : index
    %c0_22 = arith.constant 0 : index
    %43 = vector.load %arg2[%c4, %c0_21, %c0_22] : memref<9x12x1xbf16, #tpu.memory_space<vmem>>, vector<1x12x1xbf16>
    %44 = vector.shape_cast %43 : vector<1x12x1xbf16> to vector<12x1xbf16>
    %45 = arith.extf %44 : vector<12x1xbf16> to vector<12x1xf32>
    %46 = arith.extf %42 : vector<1x728xbf16> to vector<1x728xf32>
    %47 = vector.broadcast %45 : vector<12x1xf32> to vector<12x728xf32>
    %48 = vector.broadcast %46 : vector<1x728xf32> to vector<12x728xf32>
    %49 = arith.mulf %47, %48 : vector<12x728xf32>
    %50 = arith.addf %40, %49 : vector<12x728xf32>
    %c0_23 = arith.constant 0 : index
    %c0_24 = arith.constant 0 : index
    %c30 = arith.constant 30 : index
    %51 = vector.load %arg1[%c0_23, %c0_24, %c30] : memref<1x1x786xbf16, #tpu.memory_space<vmem>>, vector<1x1x728xbf16>
    %52 = vector.shape_cast %51 : vector<1x1x728xbf16> to vector<1x728xbf16>
    %c5 = arith.constant 5 : index
    %c0_25 = arith.constant 0 : index
    %c0_26 = arith.constant 0 : index
    %53 = vector.load %arg2[%c5, %c0_25, %c0_26] : memref<9x12x1xbf16, #tpu.memory_space<vmem>>, vector<1x12x1xbf16>
    %54 = vector.shape_cast %53 : vector<1x12x1xbf16> to vector<12x1xbf16>
    %55 = arith.extf %54 : vector<12x1xbf16> to vector<12x1xf32>
    %56 = arith.extf %52 : vector<1x728xbf16> to vector<1x728xf32>
    %57 = vector.broadcast %55 : vector<12x1xf32> to vector<12x728xf32>
    %58 = vector.broadcast %56 : vector<1x728xf32> to vector<12x728xf32>
    %59 = arith.mulf %57, %58 : vector<12x728xf32>
    %60 = arith.addf %50, %59 : vector<12x728xf32>
    %c0_27 = arith.constant 0 : index
    %c0_28 = arith.constant 0 : index
    %c56 = arith.constant 56 : index
    %61 = vector.load %arg1[%c0_27, %c0_28, %c56] : memref<1x1x786xbf16, #tpu.memory_space<vmem>>, vector<1x1x728xbf16>
    %62 = vector.shape_cast %61 : vector<1x1x728xbf16> to vector<1x728xbf16>
    %c6 = arith.constant 6 : index
    %c0_29 = arith.constant 0 : index
    %c0_30 = arith.constant 0 : index
    %63 = vector.load %arg2[%c6, %c0_29, %c0_30] : memref<9x12x1xbf16, #tpu.memory_space<vmem>>, vector<1x12x1xbf16>
    %64 = vector.shape_cast %63 : vector<1x12x1xbf16> to vector<12x1xbf16>
    %65 = arith.extf %64 : vector<12x1xbf16> to vector<12x1xf32>
    %66 = arith.extf %62 : vector<1x728xbf16> to vector<1x728xf32>
    %67 = vector.broadcast %65 : vector<12x1xf32> to vector<12x728xf32>
    %68 = vector.broadcast %66 : vector<1x728xf32> to vector<12x728xf32>
    %69 = arith.mulf %67, %68 : vector<12x728xf32>
    %70 = arith.addf %60, %69 : vector<12x728xf32>
    %c0_31 = arith.constant 0 : index
    %c0_32 = arith.constant 0 : index
    %c57 = arith.constant 57 : index
    %71 = vector.load %arg1[%c0_31, %c0_32, %c57] : memref<1x1x786xbf16, #tpu.memory_space<vmem>>, vector<1x1x728xbf16>
    %72 = vector.shape_cast %71 : vector<1x1x728xbf16> to vector<1x728xbf16>
    %c7 = arith.constant 7 : index
    %c0_33 = arith.constant 0 : index
    %c0_34 = arith.constant 0 : index
    %73 = vector.load %arg2[%c7, %c0_33, %c0_34] : memref<9x12x1xbf16, #tpu.memory_space<vmem>>, vector<1x12x1xbf16>
    %74 = vector.shape_cast %73 : vector<1x12x1xbf16> to vector<12x1xbf16>
    %75 = arith.extf %74 : vector<12x1xbf16> to vector<12x1xf32>
    %76 = arith.extf %72 : vector<1x728xbf16> to vector<1x728xf32>
    %77 = vector.broadcast %75 : vector<12x1xf32> to vector<12x728xf32>
    %78 = vector.broadcast %76 : vector<1x728xf32> to vector<12x728xf32>
    %79 = arith.mulf %77, %78 : vector<12x728xf32>
    %80 = arith.addf %70, %79 : vector<12x728xf32>
    %c0_35 = arith.constant 0 : index
    %c0_36 = arith.constant 0 : index
    %c58 = arith.constant 58 : index
    %81 = vector.load %arg1[%c0_35, %c0_36, %c58] : memref<1x1x786xbf16, #tpu.memory_space<vmem>>, vector<1x1x728xbf16>
    %82 = vector.shape_cast %81 : vector<1x1x728xbf16> to vector<1x728xbf16>
    %c8 = arith.constant 8 : index
    %c0_37 = arith.constant 0 : index
    %c0_38 = arith.constant 0 : index
    %83 = vector.load %arg2[%c8, %c0_37, %c0_38] : memref<9x12x1xbf16, #tpu.memory_space<vmem>>, vector<1x12x1xbf16>
    %84 = vector.shape_cast %83 : vector<1x12x1xbf16> to vector<12x1xbf16>
    %85 = arith.extf %84 : vector<12x1xbf16> to vector<12x1xf32>
    %86 = arith.extf %82 : vector<1x728xbf16> to vector<1x728xf32>
    %87 = vector.broadcast %85 : vector<12x1xf32> to vector<12x728xf32>
    %88 = vector.broadcast %86 : vector<1x728xf32> to vector<12x728xf32>
    %89 = arith.mulf %87, %88 : vector<12x728xf32>
    %90 = arith.addf %80, %89 : vector<12x728xf32>
    %c0_39 = arith.constant 0 : index
    %c0_40 = arith.constant 0 : index
    %91 = vector.load %arg3[%c0_39, %c0_40] : memref<12x1xf32, #tpu.memory_space<vmem>>, vector<12x1xf32>
    %92 = vector.broadcast %91 : vector<12x1xf32> to vector<12x728xf32>
    %93 = arith.addf %90, %92 : vector<12x728xf32>
    %cst_41 = arith.constant 0.000000e+00 : f32
    %94 = vector.broadcast %cst_41 : f32 to vector<12x728xf32>
    %95 = arith.maximumf %93, %94 : vector<12x728xf32>
    %c0_42 = arith.constant 0 : index
    %c0_43 = arith.constant 0 : index
    %c0_44 = arith.constant 0 : index
    %96 = vector.load %arg4[%c0_42, %c0_43, %c0_44] : memref<1x12x728xf32, #tpu.memory_space<vmem>>, vector<1x12x728xf32>
    %97 = vector.shape_cast %96 : vector<1x12x728xf32> to vector<12x728xf32>
    %98 = vector.shape_cast %95 : vector<12x728xf32> to vector<1x12x728xf32>
    tpu.vector_store %arg4[%c0_42, %c0_43, %c0_44], %98 {strides = array<i32>} : memref<1x12x728xf32, #tpu.memory_space<vmem>>, vector<1x12x728xf32>,
    return
  }
  func.func @transform_0(%arg0: i32) -> (i32, i32, i32) {
    %c0_i32 = arith.constant 0 : i32
    %c0_i32_0 = arith.constant 0 : i32
    %c0_i32_1 = arith.constant 0 : i32
    return %arg0, %c0_i32, %c0_i32_0 : i32, i32, i32
  }
  func.func @transform_1(%arg0: i32) -> (i32, i32, i32) {
    %c0_i32 = arith.constant 0 : i32
    %c0_i32_0 = arith.constant 0 : i32
    %c0_i32_1 = arith.constant 0 : i32
    %c0_i32_2 = arith.constant 0 : i32
    return %c0_i32, %c0_i32_0, %c0_i32_1 : i32, i32, i32
  }
  func.func @transform_2(%arg0: i32) -> (i32, i32) {
    %c0_i32 = arith.constant 0 : i32
    %c0_i32_0 = arith.constant 0 : i32
    %c0_i32_1 = arith.constant 0 : i32
    return %c0_i32, %c0_i32_0 : i32, i32
  }
  func.func @transform_3(%arg0: i32) -> (i32, i32, i32) {
    %c0_i32 = arith.constant 0 : i32
    %c0_i32_0 = arith.constant 0 : i32
    %c0_i32_1 = arith.constant 0 : i32
    return %arg0, %c0_i32, %c0_i32_0 : i32, i32, i32
  }
}

module attributes {stable_mosaic.version = 11 : i64} {
  func.func @_conv3x3_relu_kernel(%arg0: i32, %arg1: memref<1x12x730xbf16, #tpu.memory_space<vmem>>, %arg2: memref<9x12x12xbf16, #tpu.memory_space<vmem>>, %arg3: memref<12x1xf32, #tpu.memory_space<vmem>>, %arg4: memref<1x12x672xf32, #tpu.memory_space<vmem>>) attributes {dimension_semantics = [#tpu.dimension_semantics<parallel>], iteration_bounds = array<i64: 2>, scalar_prefetch = 0 : i64, scratch_operands = 0 : i64, tpu.core_type = #tpu.core_type<tc>, window_params = [{transform_indices = @transform_0, window_bounds = array<i64: 1, 12, 730>}, {pipeline_mode = #tpu.pipeline_mode<synchronous>, transform_indices = @transform_1, window_bounds = array<i64: 9, 12, 12>}, {pipeline_mode = #tpu.pipeline_mode<synchronous>, transform_indices = @transform_2, window_bounds = array<i64: 12, 1>}, {transform_indices = @transform_3, window_bounds = array<i64: 1, 12, 672>}]} {
    %cst = arith.constant 0.000000e+00 : f32
    %0 = vector.broadcast %cst : f32 to vector<12x672xf32>
    %c0 = arith.constant 0 : index
    %c0_0 = arith.constant 0 : index
    %c0_1 = arith.constant 0 : index
    %1 = vector.load %arg1[%c0, %c0_0, %c0_1] : memref<1x12x730xbf16, #tpu.memory_space<vmem>>, vector<1x12x672xbf16>
    %2 = vector.shape_cast %1 : vector<1x12x672xbf16> to vector<12x672xbf16>
    %c0_2 = arith.constant 0 : index
    %c0_3 = arith.constant 0 : index
    %c0_4 = arith.constant 0 : index
    %3 = vector.load %arg2[%c0_2, %c0_3, %c0_4] : memref<9x12x12xbf16, #tpu.memory_space<vmem>>, vector<1x12x12xbf16>
    %4 = vector.shape_cast %3 : vector<1x12x12xbf16> to vector<12x12xbf16>
    %cst_5 = arith.constant dense<0.000000e+00> : vector<12x672xf32>
    %5 = tpu.matmul %4, %2, %cst_5 {dimension_numbers = #tpu.dot_dimension_numbers<[1], [0], [0], [1], [0, 0, 1, 1], [], []>} : vector<12x12xbf16>, vector<12x672xbf16>, vector<12x672xf32> -> vector<12x672xf32>
    %6 = arith.addf %0, %5 : vector<12x672xf32>
    %c0_6 = arith.constant 0 : index
    %c0_7 = arith.constant 0 : index
    %c1 = arith.constant 1 : index
    %7 = vector.load %arg1[%c0_6, %c0_7, %c1] : memref<1x12x730xbf16, #tpu.memory_space<vmem>>, vector<1x12x672xbf16>
    %8 = vector.shape_cast %7 : vector<1x12x672xbf16> to vector<12x672xbf16>
    %c1_8 = arith.constant 1 : index
    %c0_9 = arith.constant 0 : index
    %c0_10 = arith.constant 0 : index
    %9 = vector.load %arg2[%c1_8, %c0_9, %c0_10] : memref<9x12x12xbf16, #tpu.memory_space<vmem>>, vector<1x12x12xbf16>
    %10 = vector.shape_cast %9 : vector<1x12x12xbf16> to vector<12x12xbf16>
    %cst_11 = arith.constant dense<0.000000e+00> : vector<12x672xf32>
    %11 = tpu.matmul %10, %8, %cst_11 {dimension_numbers = #tpu.dot_dimension_numbers<[1], [0], [0], [1], [0, 0, 1, 1], [], []>} : vector<12x12xbf16>, vector<12x672xbf16>, vector<12x672xf32> -> vector<12x672xf32>
    %12 = arith.addf %6, %11 : vector<12x672xf32>
    %c0_12 = arith.constant 0 : index
    %c0_13 = arith.constant 0 : index
    %c2 = arith.constant 2 : index
    %13 = vector.load %arg1[%c0_12, %c0_13, %c2] : memref<1x12x730xbf16, #tpu.memory_space<vmem>>, vector<1x12x672xbf16>
    %14 = vector.shape_cast %13 : vector<1x12x672xbf16> to vector<12x672xbf16>
    %c2_14 = arith.constant 2 : index
    %c0_15 = arith.constant 0 : index
    %c0_16 = arith.constant 0 : index
    %15 = vector.load %arg2[%c2_14, %c0_15, %c0_16] : memref<9x12x12xbf16, #tpu.memory_space<vmem>>, vector<1x12x12xbf16>
    %16 = vector.shape_cast %15 : vector<1x12x12xbf16> to vector<12x12xbf16>
    %cst_17 = arith.constant dense<0.000000e+00> : vector<12x672xf32>
    %17 = tpu.matmul %16, %14, %cst_17 {dimension_numbers = #tpu.dot_dimension_numbers<[1], [0], [0], [1], [0, 0, 1, 1], [], []>} : vector<12x12xbf16>, vector<12x672xbf16>, vector<12x672xf32> -> vector<12x672xf32>
    %18 = arith.addf %12, %17 : vector<12x672xf32>
    %c0_18 = arith.constant 0 : index
    %c0_19 = arith.constant 0 : index
    %c28 = arith.constant 28 : index
    %19 = vector.load %arg1[%c0_18, %c0_19, %c28] : memref<1x12x730xbf16, #tpu.memory_space<vmem>>, vector<1x12x672xbf16>
    %20 = vector.shape_cast %19 : vector<1x12x672xbf16> to vector<12x672xbf16>
    %c3 = arith.constant 3 : index
    %c0_20 = arith.constant 0 : index
    %c0_21 = arith.constant 0 : index
    %21 = vector.load %arg2[%c3, %c0_20, %c0_21] : memref<9x12x12xbf16, #tpu.memory_space<vmem>>, vector<1x12x12xbf16>
    %22 = vector.shape_cast %21 : vector<1x12x12xbf16> to vector<12x12xbf16>
    %cst_22 = arith.constant dense<0.000000e+00> : vector<12x672xf32>
    %23 = tpu.matmul %22, %20, %cst_22 {dimension_numbers = #tpu.dot_dimension_numbers<[1], [0], [0], [1], [0, 0, 1, 1], [], []>} : vector<12x12xbf16>, vector<12x672xbf16>, vector<12x672xf32> -> vector<12x672xf32>
    %24 = arith.addf %18, %23 : vector<12x672xf32>
    %c0_23 = arith.constant 0 : index
    %c0_24 = arith.constant 0 : index
    %c29 = arith.constant 29 : index
    %25 = vector.load %arg1[%c0_23, %c0_24, %c29] : memref<1x12x730xbf16, #tpu.memory_space<vmem>>, vector<1x12x672xbf16>
    %26 = vector.shape_cast %25 : vector<1x12x672xbf16> to vector<12x672xbf16>
    %c4 = arith.constant 4 : index
    %c0_25 = arith.constant 0 : index
    %c0_26 = arith.constant 0 : index
    %27 = vector.load %arg2[%c4, %c0_25, %c0_26] : memref<9x12x12xbf16, #tpu.memory_space<vmem>>, vector<1x12x12xbf16>
    %28 = vector.shape_cast %27 : vector<1x12x12xbf16> to vector<12x12xbf16>
    %cst_27 = arith.constant dense<0.000000e+00> : vector<12x672xf32>
    %29 = tpu.matmul %28, %26, %cst_27 {dimension_numbers = #tpu.dot_dimension_numbers<[1], [0], [0], [1], [0, 0, 1, 1], [], []>} : vector<12x12xbf16>, vector<12x672xbf16>, vector<12x672xf32> -> vector<12x672xf32>
    %30 = arith.addf %24, %29 : vector<12x672xf32>
    %c0_28 = arith.constant 0 : index
    %c0_29 = arith.constant 0 : index
    %c30 = arith.constant 30 : index
    %31 = vector.load %arg1[%c0_28, %c0_29, %c30] : memref<1x12x730xbf16, #tpu.memory_space<vmem>>, vector<1x12x672xbf16>
    %32 = vector.shape_cast %31 : vector<1x12x672xbf16> to vector<12x672xbf16>
    %c5 = arith.constant 5 : index
    %c0_30 = arith.constant 0 : index
    %c0_31 = arith.constant 0 : index
    %33 = vector.load %arg2[%c5, %c0_30, %c0_31] : memref<9x12x12xbf16, #tpu.memory_space<vmem>>, vector<1x12x12xbf16>
    %34 = vector.shape_cast %33 : vector<1x12x12xbf16> to vector<12x12xbf16>
    %cst_32 = arith.constant dense<0.000000e+00> : vector<12x672xf32>
    %35 = tpu.matmul %34, %32, %cst_32 {dimension_numbers = #tpu.dot_dimension_numbers<[1], [0], [0], [1], [0, 0, 1, 1], [], []>} : vector<12x12xbf16>, vector<12x672xbf16>, vector<12x672xf32> -> vector<12x672xf32>
    %36 = arith.addf %30, %35 : vector<12x672xf32>
    %c0_33 = arith.constant 0 : index
    %c0_34 = arith.constant 0 : index
    %c56 = arith.constant 56 : index
    %37 = vector.load %arg1[%c0_33, %c0_34, %c56] : memref<1x12x730xbf16, #tpu.memory_space<vmem>>, vector<1x12x672xbf16>
    %38 = vector.shape_cast %37 : vector<1x12x672xbf16> to vector<12x672xbf16>
    %c6 = arith.constant 6 : index
    %c0_35 = arith.constant 0 : index
    %c0_36 = arith.constant 0 : index
    %39 = vector.load %arg2[%c6, %c0_35, %c0_36] : memref<9x12x12xbf16, #tpu.memory_space<vmem>>, vector<1x12x12xbf16>
    %40 = vector.shape_cast %39 : vector<1x12x12xbf16> to vector<12x12xbf16>
    %cst_37 = arith.constant dense<0.000000e+00> : vector<12x672xf32>
    %41 = tpu.matmul %40, %38, %cst_37 {dimension_numbers = #tpu.dot_dimension_numbers<[1], [0], [0], [1], [0, 0, 1, 1], [], []>} : vector<12x12xbf16>, vector<12x672xbf16>, vector<12x672xf32> -> vector<12x672xf32>
    %42 = arith.addf %36, %41 : vector<12x672xf32>
    %c0_38 = arith.constant 0 : index
    %c0_39 = arith.constant 0 : index
    %c57 = arith.constant 57 : index
    %43 = vector.load %arg1[%c0_38, %c0_39, %c57] : memref<1x12x730xbf16, #tpu.memory_space<vmem>>, vector<1x12x672xbf16>
    %44 = vector.shape_cast %43 : vector<1x12x672xbf16> to vector<12x672xbf16>
    %c7 = arith.constant 7 : index
    %c0_40 = arith.constant 0 : index
    %c0_41 = arith.constant 0 : index
    %45 = vector.load %arg2[%c7, %c0_40, %c0_41] : memref<9x12x12xbf16, #tpu.memory_space<vmem>>, vector<1x12x12xbf16>
    %46 = vector.shape_cast %45 : vector<1x12x12xbf16> to vector<12x12xbf16>
    %cst_42 = arith.constant dense<0.000000e+00> : vector<12x672xf32>
    %47 = tpu.matmul %46, %44, %cst_42 {dimension_numbers = #tpu.dot_dimension_numbers<[1], [0], [0], [1], [0, 0, 1, 1], [], []>} : vector<12x12xbf16>, vector<12x672xbf16>, vector<12x672xf32> -> vector<12x672xf32>
    %48 = arith.addf %42, %47 : vector<12x672xf32>
    %c0_43 = arith.constant 0 : index
    %c0_44 = arith.constant 0 : index
    %c58 = arith.constant 58 : index
    %49 = vector.load %arg1[%c0_43, %c0_44, %c58] : memref<1x12x730xbf16, #tpu.memory_space<vmem>>, vector<1x12x672xbf16>
    %50 = vector.shape_cast %49 : vector<1x12x672xbf16> to vector<12x672xbf16>
    %c8 = arith.constant 8 : index
    %c0_45 = arith.constant 0 : index
    %c0_46 = arith.constant 0 : index
    %51 = vector.load %arg2[%c8, %c0_45, %c0_46] : memref<9x12x12xbf16, #tpu.memory_space<vmem>>, vector<1x12x12xbf16>
    %52 = vector.shape_cast %51 : vector<1x12x12xbf16> to vector<12x12xbf16>
    %cst_47 = arith.constant dense<0.000000e+00> : vector<12x672xf32>
    %53 = tpu.matmul %52, %50, %cst_47 {dimension_numbers = #tpu.dot_dimension_numbers<[1], [0], [0], [1], [0, 0, 1, 1], [], []>} : vector<12x12xbf16>, vector<12x672xbf16>, vector<12x672xf32> -> vector<12x672xf32>
    %54 = arith.addf %48, %53 : vector<12x672xf32>
    %c0_48 = arith.constant 0 : index
    %c0_49 = arith.constant 0 : index
    %55 = vector.load %arg3[%c0_48, %c0_49] : memref<12x1xf32, #tpu.memory_space<vmem>>, vector<12x1xf32>
    %56 = vector.broadcast %55 : vector<12x1xf32> to vector<12x672xf32>
    %57 = arith.addf %54, %56 : vector<12x672xf32>
    %cst_50 = arith.constant 0.000000e+00 : f32
    %58 = vector.broadcast %cst_50 : f32 to vector<12x672xf32>
    %59 = arith.maximumf %57, %58 : vector<12x672xf32>
    %c0_51 = arith.constant 0 : index
    %c0_52 = arith.constant 0 : index
    %c0_53 = arith.constant 0 : index
    %60 = vector.load %arg4[%c0_51, %c0_52, %c0_53] : memref<1x12x672xf32, #tpu.memory_space<vmem>>, vector<1x12x672xf32>
    %61 = vector.shape_cast %60 : vector<1x12x672xf32> to vector<12x672xf32>
    %62 = vector.shape_cast %59 : vector<12x672xf32> to vector<1x12x672xf32>
    tpu.vector_store %arg4[%c0_51, %c0_52, %c0_53], %62 {strides = array<i32>} : memref<1x12x672xf32, #tpu.memory_space<vmem>>, vector<1x12x672xf32>,
    return
  }
  func.func @transform_0(%arg0: i32) -> (i32, i32, i32) {
    %c0_i32 = arith.constant 0 : i32
    %c0_i32_0 = arith.constant 0 : i32
    %c0_i32_1 = arith.constant 0 : i32
    return %arg0, %c0_i32, %c0_i32_0 : i32, i32, i32
  }
  func.func @transform_1(%arg0: i32) -> (i32, i32, i32) {
    %c0_i32 = arith.constant 0 : i32
    %c0_i32_0 = arith.constant 0 : i32
    %c0_i32_1 = arith.constant 0 : i32
    %c0_i32_2 = arith.constant 0 : i32
    return %c0_i32, %c0_i32_0, %c0_i32_1 : i32, i32, i32
  }
  func.func @transform_2(%arg0: i32) -> (i32, i32) {
    %c0_i32 = arith.constant 0 : i32
    %c0_i32_0 = arith.constant 0 : i32
    %c0_i32_1 = arith.constant 0 : i32
    return %c0_i32, %c0_i32_0 : i32, i32
  }
  func.func @transform_3(%arg0: i32) -> (i32, i32, i32) {
    %c0_i32 = arith.constant 0 : i32
    %c0_i32_0 = arith.constant 0 : i32
    %c0_i32_1 = arith.constant 0 : i32
    return %arg0, %c0_i32, %c0_i32_0 : i32, i32, i32
  }
}

module attributes {stable_mosaic.version = 11 : i64} {
  func.func @_conv3x3_relu_kernel(%arg0: i32, %arg1: memref<1x12x66xbf16, #tpu.memory_space<vmem>>, %arg2: memref<9x24x12xbf16, #tpu.memory_space<vmem>>, %arg3: memref<24x1xf32, #tpu.memory_space<vmem>>, %arg4: memref<1x24x48xf32, #tpu.memory_space<vmem>>) attributes {dimension_semantics = [#tpu.dimension_semantics<parallel>], iteration_bounds = array<i64: 2>, scalar_prefetch = 0 : i64, scratch_operands = 0 : i64, tpu.core_type = #tpu.core_type<tc>, window_params = [{transform_indices = @transform_0, window_bounds = array<i64: 1, 12, 66>}, {pipeline_mode = #tpu.pipeline_mode<synchronous>, transform_indices = @transform_1, window_bounds = array<i64: 9, 24, 12>}, {pipeline_mode = #tpu.pipeline_mode<synchronous>, transform_indices = @transform_2, window_bounds = array<i64: 24, 1>}, {transform_indices = @transform_3, window_bounds = array<i64: 1, 24, 48>}]} {
    %cst = arith.constant 0.000000e+00 : f32
    %0 = vector.broadcast %cst : f32 to vector<24x48xf32>
    %c0 = arith.constant 0 : index
    %c0_0 = arith.constant 0 : index
    %c0_1 = arith.constant 0 : index
    %1 = vector.load %arg1[%c0, %c0_0, %c0_1] : memref<1x12x66xbf16, #tpu.memory_space<vmem>>, vector<1x12x48xbf16>
    %2 = vector.shape_cast %1 : vector<1x12x48xbf16> to vector<12x48xbf16>
    %c0_2 = arith.constant 0 : index
    %c0_3 = arith.constant 0 : index
    %c0_4 = arith.constant 0 : index
    %3 = vector.load %arg2[%c0_2, %c0_3, %c0_4] : memref<9x24x12xbf16, #tpu.memory_space<vmem>>, vector<1x24x12xbf16>
    %4 = vector.shape_cast %3 : vector<1x24x12xbf16> to vector<24x12xbf16>
    %cst_5 = arith.constant dense<0.000000e+00> : vector<24x48xf32>
    %5 = tpu.matmul %4, %2, %cst_5 {dimension_numbers = #tpu.dot_dimension_numbers<[1], [0], [0], [1], [0, 0, 1, 1], [], []>} : vector<24x12xbf16>, vector<12x48xbf16>, vector<24x48xf32> -> vector<24x48xf32>
    %6 = arith.addf %0, %5 : vector<24x48xf32>
    %c0_6 = arith.constant 0 : index
    %c0_7 = arith.constant 0 : index
    %c1 = arith.constant 1 : index
    %7 = vector.load %arg1[%c0_6, %c0_7, %c1] : memref<1x12x66xbf16, #tpu.memory_space<vmem>>, vector<1x12x48xbf16>
    %8 = vector.shape_cast %7 : vector<1x12x48xbf16> to vector<12x48xbf16>
    %c1_8 = arith.constant 1 : index
    %c0_9 = arith.constant 0 : index
    %c0_10 = arith.constant 0 : index
    %9 = vector.load %arg2[%c1_8, %c0_9, %c0_10] : memref<9x24x12xbf16, #tpu.memory_space<vmem>>, vector<1x24x12xbf16>
    %10 = vector.shape_cast %9 : vector<1x24x12xbf16> to vector<24x12xbf16>
    %cst_11 = arith.constant dense<0.000000e+00> : vector<24x48xf32>
    %11 = tpu.matmul %10, %8, %cst_11 {dimension_numbers = #tpu.dot_dimension_numbers<[1], [0], [0], [1], [0, 0, 1, 1], [], []>} : vector<24x12xbf16>, vector<12x48xbf16>, vector<24x48xf32> -> vector<24x48xf32>
    %12 = arith.addf %6, %11 : vector<24x48xf32>
    %c0_12 = arith.constant 0 : index
    %c0_13 = arith.constant 0 : index
    %c2 = arith.constant 2 : index
    %13 = vector.load %arg1[%c0_12, %c0_13, %c2] : memref<1x12x66xbf16, #tpu.memory_space<vmem>>, vector<1x12x48xbf16>
    %14 = vector.shape_cast %13 : vector<1x12x48xbf16> to vector<12x48xbf16>
    %c2_14 = arith.constant 2 : index
    %c0_15 = arith.constant 0 : index
    %c0_16 = arith.constant 0 : index
    %15 = vector.load %arg2[%c2_14, %c0_15, %c0_16] : memref<9x24x12xbf16, #tpu.memory_space<vmem>>, vector<1x24x12xbf16>
    %16 = vector.shape_cast %15 : vector<1x24x12xbf16> to vector<24x12xbf16>
    %cst_17 = arith.constant dense<0.000000e+00> : vector<24x48xf32>
    %17 = tpu.matmul %16, %14, %cst_17 {dimension_numbers = #tpu.dot_dimension_numbers<[1], [0], [0], [1], [0, 0, 1, 1], [], []>} : vector<24x12xbf16>, vector<12x48xbf16>, vector<24x48xf32> -> vector<24x48xf32>
    %18 = arith.addf %12, %17 : vector<24x48xf32>
    %c0_18 = arith.constant 0 : index
    %c0_19 = arith.constant 0 : index
    %c8 = arith.constant 8 : index
    %19 = vector.load %arg1[%c0_18, %c0_19, %c8] : memref<1x12x66xbf16, #tpu.memory_space<vmem>>, vector<1x12x48xbf16>
    %20 = vector.shape_cast %19 : vector<1x12x48xbf16> to vector<12x48xbf16>
    %c3 = arith.constant 3 : index
    %c0_20 = arith.constant 0 : index
    %c0_21 = arith.constant 0 : index
    %21 = vector.load %arg2[%c3, %c0_20, %c0_21] : memref<9x24x12xbf16, #tpu.memory_space<vmem>>, vector<1x24x12xbf16>
    %22 = vector.shape_cast %21 : vector<1x24x12xbf16> to vector<24x12xbf16>
    %cst_22 = arith.constant dense<0.000000e+00> : vector<24x48xf32>
    %23 = tpu.matmul %22, %20, %cst_22 {dimension_numbers = #tpu.dot_dimension_numbers<[1], [0], [0], [1], [0, 0, 1, 1], [], []>} : vector<24x12xbf16>, vector<12x48xbf16>, vector<24x48xf32> -> vector<24x48xf32>
    %24 = arith.addf %18, %23 : vector<24x48xf32>
    %c0_23 = arith.constant 0 : index
    %c0_24 = arith.constant 0 : index
    %c9 = arith.constant 9 : index
    %25 = vector.load %arg1[%c0_23, %c0_24, %c9] : memref<1x12x66xbf16, #tpu.memory_space<vmem>>, vector<1x12x48xbf16>
    %26 = vector.shape_cast %25 : vector<1x12x48xbf16> to vector<12x48xbf16>
    %c4 = arith.constant 4 : index
    %c0_25 = arith.constant 0 : index
    %c0_26 = arith.constant 0 : index
    %27 = vector.load %arg2[%c4, %c0_25, %c0_26] : memref<9x24x12xbf16, #tpu.memory_space<vmem>>, vector<1x24x12xbf16>
    %28 = vector.shape_cast %27 : vector<1x24x12xbf16> to vector<24x12xbf16>
    %cst_27 = arith.constant dense<0.000000e+00> : vector<24x48xf32>
    %29 = tpu.matmul %28, %26, %cst_27 {dimension_numbers = #tpu.dot_dimension_numbers<[1], [0], [0], [1], [0, 0, 1, 1], [], []>} : vector<24x12xbf16>, vector<12x48xbf16>, vector<24x48xf32> -> vector<24x48xf32>
    %30 = arith.addf %24, %29 : vector<24x48xf32>
    %c0_28 = arith.constant 0 : index
    %c0_29 = arith.constant 0 : index
    %c10 = arith.constant 10 : index
    %31 = vector.load %arg1[%c0_28, %c0_29, %c10] : memref<1x12x66xbf16, #tpu.memory_space<vmem>>, vector<1x12x48xbf16>
    %32 = vector.shape_cast %31 : vector<1x12x48xbf16> to vector<12x48xbf16>
    %c5 = arith.constant 5 : index
    %c0_30 = arith.constant 0 : index
    %c0_31 = arith.constant 0 : index
    %33 = vector.load %arg2[%c5, %c0_30, %c0_31] : memref<9x24x12xbf16, #tpu.memory_space<vmem>>, vector<1x24x12xbf16>
    %34 = vector.shape_cast %33 : vector<1x24x12xbf16> to vector<24x12xbf16>
    %cst_32 = arith.constant dense<0.000000e+00> : vector<24x48xf32>
    %35 = tpu.matmul %34, %32, %cst_32 {dimension_numbers = #tpu.dot_dimension_numbers<[1], [0], [0], [1], [0, 0, 1, 1], [], []>} : vector<24x12xbf16>, vector<12x48xbf16>, vector<24x48xf32> -> vector<24x48xf32>
    %36 = arith.addf %30, %35 : vector<24x48xf32>
    %c0_33 = arith.constant 0 : index
    %c0_34 = arith.constant 0 : index
    %c16 = arith.constant 16 : index
    %37 = vector.load %arg1[%c0_33, %c0_34, %c16] : memref<1x12x66xbf16, #tpu.memory_space<vmem>>, vector<1x12x48xbf16>
    %38 = vector.shape_cast %37 : vector<1x12x48xbf16> to vector<12x48xbf16>
    %c6 = arith.constant 6 : index
    %c0_35 = arith.constant 0 : index
    %c0_36 = arith.constant 0 : index
    %39 = vector.load %arg2[%c6, %c0_35, %c0_36] : memref<9x24x12xbf16, #tpu.memory_space<vmem>>, vector<1x24x12xbf16>
    %40 = vector.shape_cast %39 : vector<1x24x12xbf16> to vector<24x12xbf16>
    %cst_37 = arith.constant dense<0.000000e+00> : vector<24x48xf32>
    %41 = tpu.matmul %40, %38, %cst_37 {dimension_numbers = #tpu.dot_dimension_numbers<[1], [0], [0], [1], [0, 0, 1, 1], [], []>} : vector<24x12xbf16>, vector<12x48xbf16>, vector<24x48xf32> -> vector<24x48xf32>
    %42 = arith.addf %36, %41 : vector<24x48xf32>
    %c0_38 = arith.constant 0 : index
    %c0_39 = arith.constant 0 : index
    %c17 = arith.constant 17 : index
    %43 = vector.load %arg1[%c0_38, %c0_39, %c17] : memref<1x12x66xbf16, #tpu.memory_space<vmem>>, vector<1x12x48xbf16>
    %44 = vector.shape_cast %43 : vector<1x12x48xbf16> to vector<12x48xbf16>
    %c7 = arith.constant 7 : index
    %c0_40 = arith.constant 0 : index
    %c0_41 = arith.constant 0 : index
    %45 = vector.load %arg2[%c7, %c0_40, %c0_41] : memref<9x24x12xbf16, #tpu.memory_space<vmem>>, vector<1x24x12xbf16>
    %46 = vector.shape_cast %45 : vector<1x24x12xbf16> to vector<24x12xbf16>
    %cst_42 = arith.constant dense<0.000000e+00> : vector<24x48xf32>
    %47 = tpu.matmul %46, %44, %cst_42 {dimension_numbers = #tpu.dot_dimension_numbers<[1], [0], [0], [1], [0, 0, 1, 1], [], []>} : vector<24x12xbf16>, vector<12x48xbf16>, vector<24x48xf32> -> vector<24x48xf32>
    %48 = arith.addf %42, %47 : vector<24x48xf32>
    %c0_43 = arith.constant 0 : index
    %c0_44 = arith.constant 0 : index
    %c18 = arith.constant 18 : index
    %49 = vector.load %arg1[%c0_43, %c0_44, %c18] : memref<1x12x66xbf16, #tpu.memory_space<vmem>>, vector<1x12x48xbf16>
    %50 = vector.shape_cast %49 : vector<1x12x48xbf16> to vector<12x48xbf16>
    %c8_45 = arith.constant 8 : index
    %c0_46 = arith.constant 0 : index
    %c0_47 = arith.constant 0 : index
    %51 = vector.load %arg2[%c8_45, %c0_46, %c0_47] : memref<9x24x12xbf16, #tpu.memory_space<vmem>>, vector<1x24x12xbf16>
    %52 = vector.shape_cast %51 : vector<1x24x12xbf16> to vector<24x12xbf16>
    %cst_48 = arith.constant dense<0.000000e+00> : vector<24x48xf32>
    %53 = tpu.matmul %52, %50, %cst_48 {dimension_numbers = #tpu.dot_dimension_numbers<[1], [0], [0], [1], [0, 0, 1, 1], [], []>} : vector<24x12xbf16>, vector<12x48xbf16>, vector<24x48xf32> -> vector<24x48xf32>
    %54 = arith.addf %48, %53 : vector<24x48xf32>
    %c0_49 = arith.constant 0 : index
    %c0_50 = arith.constant 0 : index
    %55 = vector.load %arg3[%c0_49, %c0_50] : memref<24x1xf32, #tpu.memory_space<vmem>>, vector<24x1xf32>
    %56 = vector.broadcast %55 : vector<24x1xf32> to vector<24x48xf32>
    %57 = arith.addf %54, %56 : vector<24x48xf32>
    %cst_51 = arith.constant 0.000000e+00 : f32
    %58 = vector.broadcast %cst_51 : f32 to vector<24x48xf32>
    %59 = arith.maximumf %57, %58 : vector<24x48xf32>
    %c0_52 = arith.constant 0 : index
    %c0_53 = arith.constant 0 : index
    %c0_54 = arith.constant 0 : index
    %60 = vector.load %arg4[%c0_52, %c0_53, %c0_54] : memref<1x24x48xf32, #tpu.memory_space<vmem>>, vector<1x24x48xf32>
    %61 = vector.shape_cast %60 : vector<1x24x48xf32> to vector<24x48xf32>
    %62 = vector.shape_cast %59 : vector<24x48xf32> to vector<1x24x48xf32>
    tpu.vector_store %arg4[%c0_52, %c0_53, %c0_54], %62 {strides = array<i32>} : memref<1x24x48xf32, #tpu.memory_space<vmem>>, vector<1x24x48xf32>,
    return
  }
  func.func @transform_0(%arg0: i32) -> (i32, i32, i32) {
    %c0_i32 = arith.constant 0 : i32
    %c0_i32_0 = arith.constant 0 : i32
    %c0_i32_1 = arith.constant 0 : i32
    return %arg0, %c0_i32, %c0_i32_0 : i32, i32, i32
  }
  func.func @transform_1(%arg0: i32) -> (i32, i32, i32) {
    %c0_i32 = arith.constant 0 : i32
    %c0_i32_0 = arith.constant 0 : i32
    %c0_i32_1 = arith.constant 0 : i32
    %c0_i32_2 = arith.constant 0 : i32
    return %c0_i32, %c0_i32_0, %c0_i32_1 : i32, i32, i32
  }
  func.func @transform_2(%arg0: i32) -> (i32, i32) {
    %c0_i32 = arith.constant 0 : i32
    %c0_i32_0 = arith.constant 0 : i32
    %c0_i32_1 = arith.constant 0 : i32
    return %c0_i32, %c0_i32_0 : i32, i32
  }
  func.func @transform_3(%arg0: i32) -> (i32, i32, i32) {
    %c0_i32 = arith.constant 0 : i32
    %c0_i32_0 = arith.constant 0 : i32
    %c0_i32_1 = arith.constant 0 : i32
    return %arg0, %c0_i32, %c0_i32_0 : i32, i32, i32
  }
}

module attributes {stable_mosaic.version = 11 : i64} {
  func.func @_head_kernel(%arg0: i32, %arg1: memref<2x96xf32, #tpu.memory_space<vmem>>, %arg2: memref<96x50xf32, #tpu.memory_space<vmem>>, %arg3: memref<1x50xf32, #tpu.memory_space<vmem>>, %arg4: memref<50x10xf32, #tpu.memory_space<vmem>>, %arg5: memref<1x10xf32, #tpu.memory_space<vmem>>, %arg6: memref<2x10xf32, #tpu.memory_space<vmem>>) attributes {dimension_semantics = [#tpu.dimension_semantics<arbitrary>], iteration_bounds = array<i64: 1>, scalar_prefetch = 0 : i64, scratch_operands = 0 : i64, tpu.core_type = #tpu.core_type<tc>, window_params = [{pipeline_mode = #tpu.pipeline_mode<synchronous>, transform_indices = @transform_0, window_bounds = array<i64: 2, 96>}, {pipeline_mode = #tpu.pipeline_mode<synchronous>, transform_indices = @transform_1, window_bounds = array<i64: 96, 50>}, {pipeline_mode = #tpu.pipeline_mode<synchronous>, transform_indices = @transform_2, window_bounds = array<i64: 1, 50>}, {pipeline_mode = #tpu.pipeline_mode<synchronous>, transform_indices = @transform_3, window_bounds = array<i64: 50, 10>}, {pipeline_mode = #tpu.pipeline_mode<synchronous>, transform_indices = @transform_4, window_bounds = array<i64: 1, 10>}, {pipeline_mode = #tpu.pipeline_mode<synchronous>, transform_indices = @transform_5, window_bounds = array<i64: 2, 10>}]} {
    %c0 = arith.constant 0 : index
    %c0_0 = arith.constant 0 : index
    %0 = vector.load %arg1[%c0, %c0_0] : memref<2x96xf32, #tpu.memory_space<vmem>>, vector<2x96xf32>
    %c0_1 = arith.constant 0 : index
    %c0_2 = arith.constant 0 : index
    %1 = vector.load %arg2[%c0_1, %c0_2] : memref<96x50xf32, #tpu.memory_space<vmem>>, vector<96x50xf32>
    %cst = arith.constant dense<0.000000e+00> : vector<2x50xf32>
    %2 = tpu.matmul %0, %1, %cst {dimension_numbers = #tpu.dot_dimension_numbers<[1], [0], [0], [1], [0, 0, 1, 1], [], []>} : vector<2x96xf32>, vector<96x50xf32>, vector<2x50xf32> -> vector<2x50xf32>
    %c0_3 = arith.constant 0 : index
    %c0_4 = arith.constant 0 : index
    %3 = vector.load %arg3[%c0_3, %c0_4] : memref<1x50xf32, #tpu.memory_space<vmem>>, vector<1x50xf32>
    %4 = vector.broadcast %3 : vector<1x50xf32> to vector<2x50xf32>
    %5 = arith.addf %2, %4 : vector<2x50xf32>
    %c0_5 = arith.constant 0 : index
    %c0_6 = arith.constant 0 : index
    %6 = vector.load %arg4[%c0_5, %c0_6] : memref<50x10xf32, #tpu.memory_space<vmem>>, vector<50x10xf32>
    %cst_7 = arith.constant dense<0.000000e+00> : vector<2x10xf32>
    %7 = tpu.matmul %5, %6, %cst_7 {dimension_numbers = #tpu.dot_dimension_numbers<[1], [0], [0], [1], [0, 0, 1, 1], [], []>} : vector<2x50xf32>, vector<50x10xf32>, vector<2x10xf32> -> vector<2x10xf32>
    %c0_8 = arith.constant 0 : index
    %c0_9 = arith.constant 0 : index
    %8 = vector.load %arg5[%c0_8, %c0_9] : memref<1x10xf32, #tpu.memory_space<vmem>>, vector<1x10xf32>
    %9 = vector.broadcast %8 : vector<1x10xf32> to vector<2x10xf32>
    %10 = arith.addf %7, %9 : vector<2x10xf32>
    %c0_10 = arith.constant 0 : index
    %c0_11 = arith.constant 0 : index
    %11 = vector.load %arg6[%c0_10, %c0_11] : memref<2x10xf32, #tpu.memory_space<vmem>>, vector<2x10xf32>
    tpu.vector_store %arg6[%c0_10, %c0_11], %10 {strides = array<i32>} : memref<2x10xf32, #tpu.memory_space<vmem>>, vector<2x10xf32>,
    return
  }
  func.func @transform_0(%arg0: i32) -> (i32, i32) {
    %c0_i32 = arith.constant 0 : i32
    %c0_i32_0 = arith.constant 0 : i32
    %c0_i32_1 = arith.constant 0 : i32
    return %c0_i32, %c0_i32_0 : i32, i32
  }
  func.func @transform_1(%arg0: i32) -> (i32, i32) {
    %c0_i32 = arith.constant 0 : i32
    %c0_i32_0 = arith.constant 0 : i32
    %c0_i32_1 = arith.constant 0 : i32
    return %c0_i32, %c0_i32_0 : i32, i32
  }
  func.func @transform_2(%arg0: i32) -> (i32, i32) {
    %c0_i32 = arith.constant 0 : i32
    %c0_i32_0 = arith.constant 0 : i32
    %c0_i32_1 = arith.constant 0 : i32
    return %c0_i32, %c0_i32_0 : i32, i32
  }
  func.func @transform_3(%arg0: i32) -> (i32, i32) {
    %c0_i32 = arith.constant 0 : i32
    %c0_i32_0 = arith.constant 0 : i32
    %c0_i32_1 = arith.constant 0 : i32
    return %c0_i32, %c0_i32_0 : i32, i32
  }
  func.func @transform_4(%arg0: i32) -> (i32, i32) {
    %c0_i32 = arith.constant 0 : i32
    %c0_i32_0 = arith.constant 0 : i32
    %c0_i32_1 = arith.constant 0 : i32
    return %c0_i32, %c0_i32_0 : i32, i32
  }
  func.func @transform_5(%arg0: i32) -> (i32, i32) {
    %c0_i32 = arith.constant 0 : i32
    %c0_i32_0 = arith.constant 0 : i32
    %c0_i32_1 = arith.constant 0 : i32
    return %c0_i32, %c0_i32_0 : i32, i32
  }
}

</mosaic_0001>

<bundles_post_ra>
// kernel: classifier_forward.4
= control target key start
LH: loop header
LB: loop body
LE: loop exit
PB: predicated region body
PF: predicated region fallthrough
CT: control target
= control target key end

     0   :  { %s1379_s12 = smov 0   ;;  %s2009_s0 = inlined_call_operand.vmem [shape: bf16[2,1,786], index: 0, kind: input, shape index: {}]   ;;  %s2010_s1 = inlined_call_operand.vmem [shape: bf16[9,12,1], index: 1, kind: input, shape index: {}]   ;;  %s2011_s2 = inlined_call_operand.vmem [shape: f32[12,1], index: 2, kind: input, shape index: {}]   ;;  %s2012_s3 = inlined_call_operand.vmem [shape: f32[2,12,728], index: 3, kind: output, shape index: {}]  }
   0x1 LB: > { %s1252_s13 = sadd.s32 4294967295, %s1348_s12   ;;  %p1256_p0 = scmp.ge.s32.totalorder %s1348_s12, 1  ;;  %s1348_s12 = sphi %s1379_s12, %s13_s12  }
   0x2   : > { %p136_p1 = scmp.lt.s32.totalorder %s1348_s12, 3 }
   0x4   : > { %p137_p2 = pnand %p1256_p0, %p136_p1 }
   0x5   : > { %v169_v0 = vld [vmem:[%s2010_s1] ss:$8 sps:$4 sm:$0xff] (!%p137_p2)   ;;  %v170_v1 = vld [vmem:[%s2010_s1 + $0x4] sm:$0x3] (!%p137_p2)  ;;  %v1350_v2 = vmov (!%p137_p2), 0   ;;  %p159_p3 = scmp.lt.s32.totalorder (!%p137_p2), %s1252_s13, 1  ;;  %v187_v38 = vlaneseq (!%p137_p2) }
   0x6   : > { %140 = sbr.rel (%p137_p2) target bundleno = 490 (0x1ea), region = 32  ;;  %1295 = vset.pattern.permute.xlu0 (!%p137_p2), %v1350_v2  ;;  %v171_v3 = vunpack.c.l.bf16 (!%p137_p2), %v169_v0  ;;  %v172_v4 = vunpack.c.l.bf16 (!%p137_p2), %v170_v1  ;;  %v1259_v5 = vld [vmem:[%s2010_s1 + $0xc] sm:$0x3] (!%p137_p2)  ;;  %v268_v6 = vunpack.c.h.bf16 (!%p137_p2), %v169_v0  ;;  %v1260_v7 = vld [vmem:[%s2010_s1 + $0x10] ss:$16 sps:$4 sm:$0xff] (!%p137_p2)   ;;  %1311 = vset.pattern.permute.xlu1 (!%p137_p2), %v1350_v2  ;;  %s1351_s21 = smov (!%p137_p2), 127  }
   0x7   : > { %v269_v8 = vunpack.c.l.bf16 (!%p137_p2), %v1259_v5  ;;  %v1261_v9 = vld [vmem:[%s2010_s1 + $0x14] sm:$0x3] (!%p137_p2)  ;;  %v1262_v11 = vld [vmem:[%s2010_s1 + $0x18] ss:$16 sps:$4 sm:$0xff] (!%p137_p2)   ;;  %v1263_v12 = vld [vmem:[%s2010_s1 + $0x1c] sm:$0x3] (!%p137_p2)  ;;  %v366_v13 = vunpack.c.l.bf16 (!%p137_p2), %v1260_v7  ;;  %v562_v25 = vunpack.c.h.bf16 (!%p137_p2), %v1260_v7 }
   0x8   : > { %v1296_v10 = vpack.i.bf16 (!%p137_p2), %v172_v4, %v171_v3  ;;  %v1267_v14 = vld [vmem:[%s2010_s1 + $0x2c] sm:$0x3] (!%p137_p2)  ;;  %v367_v16 = vunpack.c.l.bf16 (!%p137_p2), %v1261_v9  ;;  %v1265_v17 = vld [vmem:[%s2010_s1 + $0x24] sm:$0x3] (!%p137_p2)  ;;  %v464_v18 = vunpack.c.l.bf16 (!%p137_p2), %v1262_v11  ;;  %v465_v19 = vunpack.c.l.bf16 (!%p137_p2), %v1263_v12  ;;  %v1270_v22 = vld [vmem:[%s2010_s1 + $0x38] sm:$0xf] (!%p137_p2) }
   0x9   : > { %v1301_v15 = vpack.i.bf16 (!%p137_p2), %v269_v8, %v268_v6  ;;  %v660_v20 = vunpack.c.h.bf16 (!%p137_p2), %v1262_v11  ;;  %v661_v21 = vunpack.c.l.bf16 (!%p137_p2), %v1267_v14  ;;  %v1271_v23 = vld [vmem:[%s2010_s1 + $0x3c] sm:$0x3] (!%p137_p2)  ;;  %v563_v26 = vunpack.c.l.bf16 (!%p137_p2), %v1265_v17  ;;  %v1268_v31 = vld [vmem:[%s2010_s1 + $0x30] ss:$16 sps:$4 sm:$0xff] (!%p137_p2)   ;;  %v1269_v32 = vld [vmem:[%s2010_s1 + $0x34] sm:$0x3] (!%p137_p2) }
   0xa   : > { %1297 = vperm.xlu0 (!%p137_p2), %1295, %v1296_v10   ;;  %v1312_v24 = vpack.i.bf16 (!%p137_p2), %v465_v19, %v464_v18  ;;  %v1306_v27 = vpack.i.bf16 (!%p137_p2), %v367_v16, %v366_v13  ;;  %v934_v29 = vunpack.c.l.bf16 (!%p137_p2), %v1270_v22  ;;  %v935_v30 = vunpack.c.l.bf16 (!%p137_p2), %v1271_v23  ;;  %v1273_v37 = vld [vmem:[%s2010_s1 + $0x44] sm:$0x3] (!%p137_p2)  ;;  %s1352_s22 = smov (!%p137_p2), 126   ;;  %s1353_s23 = smov (!%p137_p2), 100  }
   0xb   : > { %v1322_v28 = vpack.i.bf16 (!%p137_p2), %v661_v21, %v660_v20  ;;  %v1317_v33 = vpack.i.bf16 (!%p137_p2), %v563_v26, %v562_v25  ;;  %v759_v34 = vunpack.c.l.bf16 (!%p137_p2), %v1268_v31  ;;  %v760_v35 = vunpack.c.l.bf16 (!%p137_p2), %v1269_v32  ;;  %s1354_s24 = smov (!%p137_p2), 99   ;;  %s1355_s25 = smov (!%p137_p2), 98  }
   0xc   : > { %1313 = vperm.xlu1 (!%p137_p2), %1311, %v1312_v24   ;;  %v1332_v36 = vpack.i.bf16 (!%p137_p2), %v935_v30, %v934_v29  ;;  %v1042_v40 = vunpack.c.h.bf16 (!%p137_p2), %v1268_v31  ;;  %v1043_v41 = vunpack.c.l.bf16 (!%p137_p2), %v1273_v37  ;;  %v188_v42 = vshrl.u32 (!%p137_p2), %v187_v38, 7  ;;  %s1356_s26 = smov (!%p137_p2), 72   ;;  %s1357_s29 = smov (!%p137_p2), 71  }
   0xd   : > { %s2014_s13 = smov (!%p159_p3, %s1252_s13), 1  ;;  %v1327_v39 = vpack.i.bf16 %v760_v35, %v759_v34  ;;  %vm328_vm0 = vcmask 1039360   ;;  %vm426_vm1 = vcmask 1031168   ;;  %vm524_vm2 = vcmask 818176   ;;  %s1358_s5 = smov 70  }
   0xe   : > { %1302 = vperm.xlu0 %1295, %v1301_v15   ;;  %s1276_s17 = smul.u32 7, %s2014_s13  ;;  %v1337_v43 = vpack.i.bf16 %v1043_v41, %v1042_v40  ;;  %v189_v44 = vsub.s32 0, %v188_v42  ;;  %v193_v46 = vsub.s32 2, %v188_v42  ;;  %v201_v47 = vsub.s32 6, %v188_v42 }
   0xf   : > { %v197_v50 = vsub.s32 4, %v188_v42  ;;  %vm622_vm3 = vcmask 809984   ;;  %vm720_vm4 = vcmask 801792   ;;  %vm894_vm5 = vcmask 588800   ;;  %s1277_s6 = smul.u32 96, %s2014_s13 }
  0x10   : > { %1323 = vperm.xlu1 %1311, %v1322_v28   ;;  %s162_s20 = scalar_lea.vmem %s2009_s0, %s1276_s17  ;;  %vm1002_vm6 = vcmask 580608   ;;  %vm1110_vm7 = vcmask 572416   ;;  %vm1188_vm8 = vcmask 719872   ;;  %vm1195_vm9 = vcmask 715776  }
  0x11   : > { %v755_v45 = vld [vmem:[%s162_s20] sm:$0x7f]  ;;  %s1924_s8 = scalar_lea.vmem %s2012_s3, %s1277_s6 }
  0x12   : > { %1307 = vperm.xlu0 %1295, %v1306_v27   ;;  %v761_v48 = vunpack.c.l.bf16 %v755_v45  ;;  %v762_v49 = vunpack.c.h.bf16 %v755_v45  ;;  %v168_v1 = vld [vmem:[%s162_s20] sm:$0x3f] }
  0x13   : > { %v173_v2 = vunpack.c.l.bf16 %v168_v1  ;;  %v174_v4 = vunpack.c.h.bf16 %v168_v1 }
  0x14   : > { %1333 = vperm.xlu1 %1311, %v1332_v36   ;;  %v782_v51 = vrot.slane %v761_v48, %v193_v46  ;;  %v790_v52 = vrot.slane %v761_v48, %v201_v47  ;;  %v798_v53 = vrot.slane %v762_v49, %v193_v46  ;;  %v778_v54 = vrot.slane %v761_v48, %v189_v44 }
  0x15   : > { %v786_v55 = vrot.slane %v761_v48, %v197_v50  ;;  %v794_v56 = vrot.slane %v762_v49, %v189_v44  ;;  %v802_v57 = vrot.slane %v762_v49, %v197_v50  ;;  %v198_v5 = vrot.slane %v173_v2, %v197_v50 }
  0x16   : > { %1318 = vperm.xlu0 %1295, %v1317_v33   ;;  %v1439_v58 = vrot.slane %v782_v51, %v189_v44  ;;  %v1441_v59 = vrot.slane %v790_v52, %v189_v44  ;;  %v1443_v60 = vrot.slane %v798_v53, %v189_v44  ;;  %v1445_v61 = vrot.slane %v778_v54, %v189_v44 }
  0x17   : > { %v1447_v62 = vrot.slane %v786_v55, %v189_v44  ;;  %v1449_v63 = vrot.slane %v794_v56, %v189_v44  ;;  %v1451_v0 = vrot.slane %v802_v57, %v189_v44  ;;  %v190_v6 = vrot.slane %v173_v2, %v189_v44 }
  0x18   : > { %v206_v8 = vrot.slane %v174_v4, %v189_v44  ;;  %v1455_v10 = vrot.slane %v198_v5, %v189_v44  ;;  %v194_v12 = vrot.slane %v173_v2, %v193_v46  ;;  %v202_v17 = vrot.slane %v173_v2, %v201_v47 }
  0x19   : > { %v1457_v11 = vrot.slane %v190_v6, %v189_v44  ;;  %v210_v22 = vrot.slane %v174_v4, %v193_v46 }
  0x1a   : > { %1328 = vperm.xlu0 %1295, %v1327_v39   ;;  %v1463_v15 = vrot.slane %v206_v8, %v189_v44  ;;  %v1465_v16 = vrot.slane %v194_v12, %v189_v44  ;;  %v1471_v21 = vrot.slane %v202_v17, %v189_v44 }
  0x1b   : > { %v1477_v25 = vrot.slane %v210_v22, %v189_v44 }
  0x1e   : > { %1338 = vperm.xlu0 %1295, %v1337_v43  }
  0x89   : > { %v1453_v3 = vpop.permute.xlu0 %1297 }
  0x8b   : > { %v1314_v41 = vpop.permute.xlu1 %1313 }
  0x8c   : > { %v1315_v44 = vunpack.i.l.bf16 %v1314_v41  ;;  %v1316_v53 = vunpack.i.h.bf16 %v1314_v41 }
  0x8d   : > { %v1303_v7 = vpop.permute.xlu0 %1302 }
  0x8e   : > { %v1304_v9 = vunpack.i.l.bf16 %v1303_v7  ;;  %v1305_v18 = vunpack.i.h.bf16 %v1303_v7  ;;  %v476_v47 = vmul.f32 %v1315_v44, %v1457_v11  ;;  %v478_v49 = vmul.f32 %v1315_v44, %v1455_v10 }
  0x8f   : > { %v480_v51 = vmul.f32 %v1315_v44, %v1463_v15  ;;  %v477_v52 = vmul.f32 %v1315_v44, %v1465_v16  ;;  %v482_v54 = vmul.f32 %v1316_v53, %v1457_v11  ;;  %v479_v55 = vmul.f32 %v1315_v44, %v1471_v21  ;;  %v1324_v22 = vpop.permute.xlu1 %1323 }
  0x90   : > { %v282_v13 = vmul.f32 %v1304_v9, %v1455_v10  ;;  %v280_v14 = vmul.f32 %v1304_v9, %v1457_v11  ;;  %v284_v19 = vmul.f32 %v1304_v9, %v1463_v15  ;;  %v281_v20 = vmul.f32 %v1304_v9, %v1465_v16 }
  0x91   : > { %v286_v23 = vmul.f32 %v1305_v18, %v1457_v11  ;;  %v283_v24 = vmul.f32 %v1304_v9, %v1471_v21  ;;  %v288_v26 = vmul.f32 %v1305_v18, %v1455_v10  ;;  %v285_v27 = vmul.f32 %v1304_v9, %v1477_v25  ;;  %v1308_v28 = vpop.permute.xlu0 %1307 }
  0x92   : > { %308 = vrot.lane.b32.xlu0 %v282_v13, %s1351_s21  ;;  %304 = vrot.lane.b32.xlu1 %v280_v14, %s1351_s21  ;;  %v1309_v29 = vunpack.i.l.bf16 %v1308_v28  ;;  %v290_v30 = vmul.f32 %v1305_v18, %v1463_v15  ;;  %v287_v31 = vmul.f32 %v1305_v18, %v1465_v16  ;;  %v289_v33 = vmul.f32 %v1305_v18, %v1471_v21 }
  0x93   : > { %v291_v35 = vmul.f32 %v1305_v18, %v1477_v25  ;;  %v1310_v36 = vunpack.i.h.bf16 %v1308_v28  ;;  %v484_v56 = vmul.f32 %v1316_v53, %v1455_v10  ;;  %v481_v57 = vmul.f32 %v1315_v44, %v1477_v25  ;;  %v1581_v41 = vpop.permute.xlu1 %1333 }
  0x94   : > { %v379_v32 = vmul.f32 %v1309_v29, %v1465_v16  ;;  %v381_v34 = vmul.f32 %v1309_v29, %v1471_v21  ;;  %v383_v37 = vmul.f32 %v1309_v29, %v1477_v25  ;;  %v378_v38 = vmul.f32 %v1309_v29, %v1457_v11 }
  0x95   : > { %v385_v39 = vmul.f32 %v1310_v36, %v1465_v16  ;;  %v380_v40 = vmul.f32 %v1309_v29, %v1455_v10  ;;  %v387_v42 = vmul.f32 %v1310_v36, %v1471_v21  ;;  %v382_v43 = vmul.f32 %v1309_v29, %v1463_v15  ;;  %v1319_v1 = vpop.permute.xlu0 %1318 }
  0x96   : > { %312 = vrot.lane.b32.xlu0 %v284_v19, %s1351_s21  ;;  %306 = vrot.lane.b32.xlu1 %v281_v20, %s1351_s21  ;;  %v389_v45 = vmul.f32 %v1310_v36, %v1477_v25  ;;  %v384_v46 = vmul.f32 %v1310_v36, %v1457_v11  ;;  %v386_v48 = vmul.f32 %v1310_v36, %v1455_v10  ;;  %v1320_v2 = vunpack.i.l.bf16 %v1319_v1 }
  0x97   : > { %v388_v50 = vmul.f32 %v1310_v36, %v1463_v15  ;;  %v486_v4 = vmul.f32 %v1316_v53, %v1463_v15  ;;  %v483_v5 = vmul.f32 %v1316_v53, %v1465_v16  ;;  %v485_v7 = vmul.f32 %v1316_v53, %v1471_v21 }
  0x98   : > { %v575_v6 = vmul.f32 %v1320_v2, %v1465_v16  ;;  %v577_v8 = vmul.f32 %v1320_v2, %v1471_v21  ;;  %v487_v9 = vmul.f32 %v1316_v53, %v1477_v25  ;;  %v1321_v12 = vunpack.i.h.bf16 %v1319_v1 }
  0x99   : > { %v579_v13 = vmul.f32 %v1320_v2, %v1477_v25  ;;  %v574_v14 = vmul.f32 %v1320_v2, %v1457_v11  ;;  %v576_v18 = vmul.f32 %v1320_v2, %v1455_v10  ;;  %v578_v20 = vmul.f32 %v1320_v2, %v1463_v15  ;;  %v1329_v36 = vpop.permute.xlu0 %1328 }
  0x9a   : > { %316 = vrot.lane.b32.xlu0 %v286_v23, %s1351_s21  ;;  %310 = vrot.lane.b32.xlu1 %v283_v24, %s1351_s21  ;;  %v581_v17 = vmul.f32 %v1321_v12, %v1465_v16  ;;  %v583_v19 = vmul.f32 %v1321_v12, %v1471_v21  ;;  %v1325_v23 = vunpack.i.l.bf16 %v1324_v22  ;;  %v585_v24 = vmul.f32 %v1321_v12, %v1477_v25 }
  0x9b   : > { %v582_v28 = vmul.f32 %v1321_v12, %v1455_v10 }
  0x9c   : > { %v675_v29 = vmul.f32 %v1325_v23, %v1471_v21 }
  0x9e   : > { %320 = vrot.lane.b32.xlu0 %v288_v26, %s1351_s21  ;;  %314 = vrot.lane.b32.xlu1 %v285_v27, %s1351_s21  ;;  %v580_v26 = vmul.f32 %v1321_v12, %v1457_v11  ;;  %v672_v27 = vmul.f32 %v1325_v23, %v1457_v11 }
  0xa2   : > { %324 = vrot.lane.b32.xlu0 %v290_v30, %s1351_s21  ;;  %318 = vrot.lane.b32.xlu1 %v287_v31, %s1351_s21  ;;  %v584_v30 = vmul.f32 %v1321_v12, %v1463_v15  ;;  %v1326_v31 = vunpack.i.h.bf16 %v1324_v22 }
  0xa6   : > { %404 = vrot.lane.b32.xlu0 %v379_v32, %s1352_s22  ;;  %322 = vrot.lane.b32.xlu1 %v289_v33, %s1351_s21  ;;  %v677_v32 = vmul.f32 %v1325_v23, %v1477_v25  ;;  %v673_v33 = vmul.f32 %v1325_v23, %v1465_v16 }
  0xaa   : > { %408 = vrot.lane.b32.xlu0 %v381_v34, %s1352_s22  ;;  %326 = vrot.lane.b32.xlu1 %v291_v35, %s1351_s21  ;;  %v679_v34 = vmul.f32 %v1326_v31, %v1465_v16  ;;  %v674_v35 = vmul.f32 %v1325_v23, %v1455_v10 }
  0xae   : > { %412 = vrot.lane.b32.xlu0 %v383_v37, %s1352_s22  ;;  %402 = vrot.lane.b32.xlu1 %v378_v38, %s1352_s22  ;;  %v681_v37 = vmul.f32 %v1326_v31, %v1471_v21  ;;  %v676_v38 = vmul.f32 %v1325_v23, %v1463_v15 }
  0xb2   : > { %416 = vrot.lane.b32.xlu0 %v385_v39, %s1352_s22  ;;  %406 = vrot.lane.b32.xlu1 %v380_v40, %s1352_s22  ;;  %v1330_v39 = vunpack.i.l.bf16 %v1329_v36  ;;  %v1579_v40 = vpop.permute.xlu0 %1338 }
  0xb6   : > { %420 = vrot.lane.b32.xlu0 %v387_v42, %s1352_s22  ;;  %410 = vrot.lane.b32.xlu1 %v382_v43, %s1352_s22  ;;  %v683_v42 = vmul.f32 %v1326_v31, %v1477_v25  ;;  %v678_v43 = vmul.f32 %v1326_v31, %v1457_v11 }
  0xba   : > { %424 = vrot.lane.b32.xlu0 %v389_v45, %s1352_s22  ;;  %414 = vrot.lane.b32.xlu1 %v384_v46, %s1352_s22  ;;  %v839_v46 = vmul.f32 %v1330_v39, %v1439_v58 }
  0xbe   : > { %500 = vrot.lane.b32.xlu0 %v476_v47, %s1353_s23  ;;  %418 = vrot.lane.b32.xlu1 %v386_v48, %s1352_s22  ;;  %v680_v47 = vmul.f32 %v1326_v31, %v1455_v10 }
  0xc2   : > { %504 = vrot.lane.b32.xlu0 %v478_v49, %s1353_s23  ;;  %422 = vrot.lane.b32.xlu1 %v388_v50, %s1352_s22  ;;  %v841_v50 = vmul.f32 %v1330_v39, %v1441_v59 }
  0xc6   : > { %508 = vrot.lane.b32.xlu0 %v480_v51, %s1353_s23  ;;  %502 = vrot.lane.b32.xlu1 %v477_v52, %s1353_s23  ;;  %v682_v51 = vmul.f32 %v1326_v31, %v1463_v15  ;;  %v1601_v52 = vunpack.i.h.bf16 %v1329_v36 }
  0xc8   : > { %v847_v12 = vmul.f32 %v1601_v52, %v1447_v62 }
  0xca   : > { %512 = vrot.lane.b32.xlu0 %v482_v54, %s1353_s23  ;;  %506 = vrot.lane.b32.xlu1 %v479_v55, %s1353_s23  ;;  %v843_v55 = vmul.f32 %v1330_v39, %v1443_v60 }
  0xce   : > { %516 = vrot.lane.b32.xlu0 %v484_v56, %s1353_s23  ;;  %510 = vrot.lane.b32.xlu1 %v481_v57, %s1353_s23  ;;  %v838_v56 = vmul.f32 %v1330_v39, %v1445_v61  ;;  %v1300_v57 = vunpack.i.h.bf16 %v1453_v3 }
  0xd0   : > { %v249_v22 = vmul.f32 %v1300_v57, %v1455_v10  ;;  %v250_v23 = vmul.f32 %v1300_v57, %v1471_v21 }
  0xd2   : > { %520 = vrot.lane.b32.xlu0 %v486_v4, %s1353_s23  ;;  %514 = vrot.lane.b32.xlu1 %v483_v5, %s1353_s23  ;;  %v845_v4 = vmul.f32 %v1601_v52, %v1445_v61  ;;  %v840_v5 = vmul.f32 %v1330_v39, %v1447_v62 }
  0xd6   : > { %600 = vrot.lane.b32.xlu0 %v575_v6, %s1354_s24  ;;  %518 = vrot.lane.b32.xlu1 %v485_v7, %s1353_s23  ;;  %v248_v7 = vmul.f32 %v1300_v57, %v1465_v16 }
  0xda   : > { %604 = vrot.lane.b32.xlu0 %v577_v8, %s1354_s24  ;;  %522 = vrot.lane.b32.xlu1 %v487_v9, %s1353_s23  ;;  %v247_v9 = vmul.f32 %v1300_v57, %v1457_v11 }
  0xde   : > { %608 = vrot.lane.b32.xlu0 %v579_v13, %s1354_s24  ;;  %598 = vrot.lane.b32.xlu1 %v574_v14, %s1354_s24  ;;  %v842_v13 = vmul.f32 %v1330_v39, %v1449_v63 }
  0xe2   : > { %612 = vrot.lane.b32.xlu0 %v581_v17, %s1354_s24  ;;  %602 = vrot.lane.b32.xlu1 %v576_v18, %s1354_s24 }
  0xe6   : > { %616 = vrot.lane.b32.xlu0 %v583_v19, %s1354_s24  ;;  %606 = vrot.lane.b32.xlu1 %v578_v20, %s1354_s24 }
  0xea   : > { %620 = vrot.lane.b32.xlu0 %v585_v24, %s1354_s24  ;;  %610 = vrot.lane.b32.xlu1 %v580_v26, %s1354_s24  ;;  %v849_v26 = vmul.f32 %v1601_v52, %v1449_v63 }
  0xee   : > { %696 = vrot.lane.b32.xlu0 %v672_v27, %s1355_s25  ;;  %614 = vrot.lane.b32.xlu1 %v582_v28, %s1354_s24  ;;  %v844_v27 = vmul.f32 %v1330_v39, %v1451_v0  ;;  %v1299_v28 = vunpack.i.l.bf16 %v1453_v3  ;;  %v851_v3 = vmul.f32 %v1601_v52, %v1451_v0 }
  0xf0   : > { %v246_v39 = vmul.f32 %v1299_v28, %v1477_v25 }
  0xf2   : > { %702 = vrot.lane.b32.xlu0 %v675_v29, %s1355_s25  ;;  %618 = vrot.lane.b32.xlu1 %v584_v30, %s1354_s24 }
  0xf6   : > { %706 = vrot.lane.b32.xlu0 %v677_v32, %s1355_s25  ;;  %698 = vrot.lane.b32.xlu1 %v673_v33, %s1355_s25  ;;  %v252_v33 = vmul.f32 %v1300_v57, %v1477_v25  ;;  %v1664_v25 = vunpack.i.l.bf16 %v1581_v41 }
  0xfa   : > { %710 = vrot.lane.b32.xlu0 %v679_v34, %s1355_s25  ;;  %700 = vrot.lane.b32.xlu1 %v674_v35, %s1355_s25  ;;  %v251_v35 = vmul.f32 %v1300_v57, %v1463_v15 }
  0xfe   : > { %714 = vrot.lane.b32.xlu0 %v681_v37, %s1355_s25  ;;  %704 = vrot.lane.b32.xlu1 %v676_v38, %s1355_s25  ;;  %v846_v37 = vmul.f32 %v1601_v52, %v1439_v58 }
 0x102   : > { %718 = vrot.lane.b32.xlu0 %v683_v42, %s1355_s25  ;;  %708 = vrot.lane.b32.xlu1 %v678_v43, %s1355_s25 }
 0x104   : > { %v1587_v44 = vpop.permute.xlu0 %308  ;;  %v305_v45 = vpop.permute.xlu1 %304 }
 0x106   : > { %868 = vrot.lane.b32.xlu0 %v839_v46, %s1356_s26  ;;  %712 = vrot.lane.b32.xlu1 %v680_v47, %s1355_s25  ;;  %v241_v46 = vmul.f32 %v1299_v28, %v1457_v11  ;;  %v848_v11 = vmul.f32 %v1601_v52, %v1441_v59 }
 0x108   : > { %v1593_v48 = vpop.permute.xlu0 %312  ;;  %v1595_v49 = vpop.permute.xlu1 %306 }
 0x109   : > { %v329_v38 = vsel %vm328_vm0, %v305_v45, %v1595_v49  ;;  %v1148_v45 = vld [vmem:[%s2011_s2 + $0x8] sm:$0xf] }
 0x10a   : > { %872 = vrot.lane.b32.xlu0 %v841_v50, %s1356_s26  ;;  %716 = vrot.lane.b32.xlu1 %v682_v51, %s1355_s25  ;;  %v351_v51 = vadd.f32 %v329_v38, %v241_v46  ;;  %v948_v46 = vmul.f32 %v1664_v25, %v1447_v62 }
 0x10c   : > { %v317_v53 = vpop.permute.xlu0 %316  ;;  %v1603_v54 = vpop.permute.xlu1 %310 }
 0x10d   : > { %v331_v57 = vsel %vm328_vm0, %v1587_v44, %v1603_v54 }
 0x10e   : > { %876 = vrot.lane.b32.xlu0 %v843_v55, %s1356_s26  ;;  %866 = vrot.lane.b32.xlu1 %v838_v56, %s1356_s26  ;;  %v330_v56 = vsel %vm328_vm0, %v1595_v49, %v1587_v44  ;;  %v947_v44 = vmul.f32 %v1664_v25, %v1439_v58 }
 0x110   : > { %v321_v1 = vpop.permute.xlu0 %320  ;;  %v1610_v2 = vpop.permute.xlu1 %314 }
 0x111   : > { %v356_v50 = vadd.f32 %v1610_v2, %v246_v39 }
 0x112   : > { %880 = vrot.lane.b32.xlu0 %v845_v4, %s1356_s26  ;;  %870 = vrot.lane.b32.xlu1 %v840_v5, %s1356_s26  ;;  %v242_v5 = vmul.f32 %v1299_v28, %v1465_v16  ;;  %v333_v16 = vsel %vm328_vm0, %v1593_v48, %v1610_v2 }
 0x114   : > { %v325_v6 = vpop.permute.xlu0 %324  ;;  %v319_v8 = vpop.permute.xlu1 %318  ;;  %v352_v49 = vadd.f32 %v330_v56, %v242_v5 }
 0x115   : > { %v334_v14 = vsel %vm328_vm0, %v317_v53, %v319_v8  ;;  %v335_v17 = vsel %vm328_vm0, %v319_v8, %v321_v1  ;;  %v244_v8 = vmul.f32 %v1299_v28, %v1471_v21 }
 0x116   : > { %v1624_v18 = vadd.f32 %v334_v14, %v247_v9  ;;  %v1626_v19 = vadd.f32 %v335_v17, %v248_v7  ;;  %884 = vrot.lane.b32.xlu0 %v847_v12, %s1356_s26  ;;  %874 = vrot.lane.b32.xlu1 %v842_v13, %s1356_s26  ;;  %v850_v14 = vmul.f32 %v1601_v52, %v1443_v60  ;;  %v1147_v52 = vld [vmem:[%s2011_s2] sm:$0xff] }
 0x118   : > { %v405_v20 = vpop.permute.xlu0 %404  ;;  %v323_v24 = vpop.permute.xlu1 %322 }
 0x119   : > { %v336_v29 = vsel %vm328_vm0, %v321_v1, %v323_v24  ;;  %v337_v30 = vsel %vm328_vm0, %v323_v24, %v325_v6 }
 0x11a   : > { %v1638_v31 = vadd.f32 %v336_v29, %v249_v22  ;;  %v1640_v32 = vadd.f32 %v337_v30, %v250_v23  ;;  %888 = vrot.lane.b32.xlu0 %v849_v26, %s1356_s26  ;;  %878 = vrot.lane.b32.xlu1 %v844_v27, %s1356_s26  ;;  %v245_v22 = vmul.f32 %v1299_v28, %v1463_v15  ;;  %v1709_v30 = vunpack.i.h.bf16 %v1581_v41 }
 0x11b   : > { %v949_v26 = vmul.f32 %v1664_v25, %v1441_v59 }
 0x11c   : > { %v409_v34 = vpop.permute.xlu0 %408  ;;  %v327_v36 = vpop.permute.xlu1 %326 }
 0x11d   : > { %v338_v42 = vsel %vm328_vm0, %v325_v6, %v327_v36  ;;  %v362_v43 = vadd.f32 %v327_v36, %v252_v33  ;;  %v243_v6 = vmul.f32 %v1299_v28, %v1455_v10  ;;  %v332_v10 = vsel %vm328_vm0, %v1603_v54, %v1593_v48 }
 0x11e   : > { %v1655_v47 = vadd.f32 %v338_v42, %v251_v35  ;;  %892 = vrot.lane.b32.xlu0 %v851_v3, %s1356_s26  ;;  %882 = vrot.lane.b32.xlu1 %v846_v37, %s1356_s26  ;;  %v354_v54 = vadd.f32 %v332_v10, %v244_v8  ;;  %v355_v48 = vadd.f32 %v333_v16, %v245_v22 }
 0x11f   : > { %v353_v9 = vadd.f32 %v331_v57, %v243_v6  ;;  %v951_v36 = vmul.f32 %v1664_v25, %v1443_v60  ;;  %v946_v3 = vmul.f32 %v1664_v25, %v1445_v61  ;;  %v953_v42 = vmul.f32 %v1709_v30, %v1445_v61 }
 0x120   : > { %v413_v53 = vpop.permute.xlu0 %412  ;;  %v403_v55 = vpop.permute.xlu1 %402  ;;  %v957_v6 = vmul.f32 %v1709_v30, %v1449_v63  ;;  %v952_v8 = vmul.f32 %v1664_v25, %v1451_v0 }
 0x121   : > { %v1674_v1 = vadd.f32 %v413_v53, %v356_v50  ;;  %v427_v4 = vsel %vm426_vm1, %v403_v55, %v405_v20  ;;  %v955_v55 = vmul.f32 %v1709_v30, %v1447_v62 }
 0x122   : > { %v1679_v7 = vadd.f32 %v427_v4, %v351_v51  ;;  %1156 = vperm.xlu0 %1295, %v1148_v45   ;;  %886 = vrot.lane.b32.xlu1 %v848_v11, %s1356_s26  ;;  %v950_v11 = vmul.f32 %v1664_v25, %v1449_v63  ;;  %v959_v25 = vmul.f32 %v1709_v30, %v1451_v0 }
 0x124   : > { %v417_v12 = vpop.permute.xlu0 %416  ;;  %v407_v13 = vpop.permute.xlu1 %406 }
 0x125   : > { %v428_v21 = vsel %vm426_vm1, %v405_v20, %v407_v13  ;;  %v429_v17 = vsel %vm426_vm1, %v407_v13, %v409_v34 }
 0x126   : > { %v450_v23 = vadd.f32 %v428_v21, %v352_v49  ;;  %v1696_v24 = vadd.f32 %v429_v17, %v353_v9  ;;  %976 = vrot.lane.b32.xlu0 %v947_v44, %s1357_s29  ;;  %890 = vrot.lane.b32.xlu1 %v850_v14, %s1356_s26  ;;  %v954_v14 = vmul.f32 %v1709_v30, %v1439_v58 }
 0x128   : > { %v421_v2 = vpop.permute.xlu0 %420  ;;  %v411_v20 = vpop.permute.xlu1 %410 }
 0x129   : > { %v430_v15 = vsel %vm426_vm1, %v409_v34, %v411_v20  ;;  %v431_v27 = vsel %vm426_vm1, %v411_v20, %v413_v53 }
 0x12a   : > { %v452_v28 = vadd.f32 %v430_v15, %v354_v54  ;;  %v453_v29 = vadd.f32 %v431_v27, %v355_v48  ;;  %980 = vrot.lane.b32.xlu0 %v949_v26, %s1357_s29  ;;  %1151 = vperm.xlu1 %1311, %v1147_v52   ;;  %v956_v52 = vmul.f32 %v1709_v30, %v1441_v59 }
 0x12b   : > { %v958_v15 = vmul.f32 %v1709_v30, %v1443_v60 }
 0x12c   : > { %v425_v33 = vpop.permute.xlu0 %424  ;;  %v415_v35 = vpop.permute.xlu1 %414 }
 0x12d   : > { %v1715_v37 = vadd.f32 %v425_v33, %v362_v43  ;;  %v432_v34 = vsel %vm426_vm1, %v415_v35, %v417_v12 }
 0x12e   : > { %v455_v38 = vadd.f32 %v432_v34, %v1624_v18  ;;  %984 = vrot.lane.b32.xlu0 %v951_v36, %s1357_s29  ;;  %974 = vrot.lane.b32.xlu1 %v946_v3, %s1357_s29 }
 0x130   : > { %v501_v41 = vpop.permute.xlu0 %500  ;;  %v419_v39 = vpop.permute.xlu1 %418 }
 0x131   : > { %v433_v50 = vsel %vm426_vm1, %v417_v12, %v419_v39  ;;  %v434_v43 = vsel %vm426_vm1, %v419_v39, %v421_v2  ;;  %v1757_v12 = vunpack.i.l.bf16 %v1579_v40 }
 0x132   : > { %v456_v45 = vadd.f32 %v433_v50, %v1626_v19  ;;  %v1729_v18 = vadd.f32 %v434_v43, %v1638_v31  ;;  %988 = vrot.lane.b32.xlu0 %v953_v42, %s1357_s29  ;;  %978 = vrot.lane.b32.xlu1 %v948_v46, %s1357_s29 }
 0x133   : > { %v1057_v26 = vmul.f32 %v1757_v12, %v1441_v59  ;;  %v1059_v3 = vmul.f32 %v1757_v12, %v1443_v60  ;;  %v1054_v30 = vmul.f32 %v1757_v12, %v1445_v61  ;;  %v1056_v50 = vmul.f32 %v1757_v12, %v1447_v62 }
 0x134   : > { %v505_v51 = vpop.permute.xlu0 %504  ;;  %v423_v53 = vpop.permute.xlu1 %422 }
 0x135   : > { %v435_v56 = vsel %vm426_vm1, %v421_v2, %v423_v53  ;;  %v436_v57 = vsel %vm426_vm1, %v423_v53, %v425_v33 }
 0x136   : > { %v458_v19 = vadd.f32 %v435_v56, %v1640_v32  ;;  %v459_v31 = vadd.f32 %v436_v57, %v1655_v47  ;;  %992 = vrot.lane.b32.xlu0 %v955_v55, %s1357_s29  ;;  %982 = vrot.lane.b32.xlu1 %v950_v11, %s1357_s29 }
 0x138   : > { %v509_v4 = vpop.permute.xlu0 %508  ;;  %v503_v5 = vpop.permute.xlu1 %502 }
 0x139   : > { %v525_v49 = vsel %vm524_vm2, %v501_v41, %v503_v5  ;;  %v526_v9 = vsel %vm524_vm2, %v503_v5, %v505_v51 }
 0x13a   : > { %v1750_v32 = vadd.f32 %v525_v49, %v1679_v7  ;;  %v1752_v47 = vadd.f32 %v526_v9, %v450_v23  ;;  %996 = vrot.lane.b32.xlu0 %v957_v6, %s1357_s29  ;;  %986 = vrot.lane.b32.xlu1 %v952_v8, %s1357_s29  ;;  %v1055_v23 = vmul.f32 %v1757_v12, %v1439_v58 }
 0x13c   : > { %v513_v13 = vpop.permute.xlu0 %512  ;;  %v507_v44 = vpop.permute.xlu1 %506 }
 0x13d   : > { %v527_v7 = vsel %vm524_vm2, %v505_v51, %v507_v44  ;;  %v528_v10 = vsel %vm524_vm2, %v507_v44, %v509_v4 }
 0x13e   : > { %v549_v16 = vadd.f32 %v527_v7, %v1696_v24  ;;  %v1766_v21 = vadd.f32 %v528_v10, %v452_v28  ;;  %1000 = vrot.lane.b32.xlu0 %v959_v25, %s1357_s29  ;;  %990 = vrot.lane.b32.xlu1 %v954_v14, %s1357_s29 }
 0x140   : > { %v517_v17 = vpop.permute.xlu0 %516  ;;  %v511_v22 = vpop.permute.xlu1 %510 }
 0x141   : > { %v529_v54 = vsel %vm524_vm2, %v509_v4, %v511_v22  ;;  %v552_v48 = vadd.f32 %v511_v22, %v1674_v1  ;;  %v1060_v4 = vmul.f32 %v1757_v12, %v1451_v0 }
 0x142   : > { %v551_v2 = vadd.f32 %v529_v54, %v453_v29  ;;  %1084 = vrot.lane.b32.xlu0 %v1055_v23, %s1358_s5  ;;  %994 = vrot.lane.b32.xlu1 %v956_v52, %s1357_s29  ;;  %v1341_v29 = vunpack.i.h.bf16 %v1579_v40 }
 0x144   : > { %v521_v24 = vpop.permute.xlu0 %520  ;;  %v515_v20 = vpop.permute.xlu1 %514  ;;  %v1061_v46 = vmul.f32 %v1341_v29, %v1445_v61  ;;  %v1063_v55 = vmul.f32 %v1341_v29, %v1447_v62  ;;  %v1058_v61 = vmul.f32 %v1757_v12, %v1449_v63  ;;  %v1064_v7 = vmul.f32 %v1341_v29, %v1441_v59 }
 0x145   : > { %v530_v27 = vsel %vm524_vm2, %v513_v13, %v515_v20  ;;  %v531_v28 = vsel %vm524_vm2, %v515_v20, %v517_v17  ;;  %v1066_v22 = vmul.f32 %v1341_v29, %v1443_v60 }
 0x146   : > { %v553_v33 = vadd.f32 %v530_v27, %v455_v38  ;;  %v1784_v1 = vadd.f32 %v531_v28, %v456_v45  ;;  %1088 = vrot.lane.b32.xlu0 %v1057_v26, %s1358_s5  ;;  %998 = vrot.lane.b32.xlu1 %v958_v15, %s1357_s29 }
 0x148   : > { %v601_v35 = vpop.permute.xlu0 %600  ;;  %v519_v36 = vpop.permute.xlu1 %518 }
 0x149   : > { %v532_v34 = vsel %vm524_vm2, %v517_v17, %v519_v36  ;;  %v533_v38 = vsel %vm524_vm2, %v519_v36, %v521_v24 }
 0x14a   : > { %v555_v41 = vadd.f32 %v532_v34, %v1729_v18  ;;  %v556_v39 = vadd.f32 %v533_v38, %v458_v19  ;;  %1092 = vrot.lane.b32.xlu0 %v1059_v3, %s1358_s5  ;;  %1082 = vrot.lane.b32.xlu1 %v1054_v30, %s1358_s5 }
 0x14c   : > { %v605_v40 = vpop.permute.xlu0 %604  ;;  %v523_v42 = vpop.permute.xlu1 %522 }
 0x14d   : > { %v534_v43 = vsel %vm524_vm2, %v521_v24, %v523_v42  ;;  %v558_v45 = vadd.f32 %v523_v42, %v1715_v37 }
 0x14e   : > { %v557_v51 = vadd.f32 %v534_v43, %v459_v31  ;;  %1096 = vrot.lane.b32.xlu0 %v1061_v46, %s1358_s5  ;;  %1086 = vrot.lane.b32.xlu1 %v1056_v50, %s1358_s5  ;;  %v1065_v31 = vmul.f32 %v1341_v29, %v1449_v63  ;;  %v1062_v63 = vmul.f32 %v1341_v29, %v1439_v58 }
 0x150   : > { %v609_v18 = vpop.permute.xlu0 %608  ;;  %v599_v53 = vpop.permute.xlu1 %598 }
 0x151   : > { %v650_v11 = vadd.f32 %v609_v18, %v552_v48  ;;  %v623_v56 = vsel %vm622_vm3, %v599_v53, %v601_v35 }
 0x152   : > { %v645_v57 = vadd.f32 %v623_v56, %v1750_v32  ;;  %1100 = vrot.lane.b32.xlu0 %v1063_v55, %s1358_s5  ;;  %1090 = vrot.lane.b32.xlu1 %v1058_v61, %s1358_s5  ;;  %v1067_v32 = vmul.f32 %v1341_v29, %v1451_v0 }
 0x154   : > { %v613_v37 = vpop.permute.xlu0 %612  ;;  %v603_v19 = vpop.permute.xlu1 %602 }
 0x155   : > { %v624_v62 = vsel %vm622_vm3, %v601_v35, %v603_v19  ;;  %v625_v5 = vsel %vm622_vm3, %v603_v19, %v605_v40 }
 0x156   : > { %v646_v6 = vadd.f32 %v624_v62, %v1752_v47  ;;  %v647_v8 = vadd.f32 %v625_v5, %v549_v16  ;;  %1104 = vrot.lane.b32.xlu0 %v1065_v31, %s1358_s5  ;;  %1094 = vrot.lane.b32.xlu1 %v1060_v4, %s1358_s5 }
 0x158   : > { %v617_v49 = vpop.permute.xlu0 %616  ;;  %v607_v9 = vpop.permute.xlu1 %606 }
 0x159   : > { %v626_v13 = vsel %vm622_vm3, %v605_v40, %v607_v9  ;;  %v627_v12 = vsel %vm622_vm3, %v607_v9, %v609_v18 }
 0x15a   : > { %v648_v44 = vadd.f32 %v626_v13, %v1766_v21  ;;  %v649_v25 = vadd.f32 %v627_v12, %v551_v2  ;;  %1108 = vrot.lane.b32.xlu0 %v1067_v32, %s1358_s5  ;;  %1098 = vrot.lane.b32.xlu1 %v1062_v63, %s1358_s5 }
 0x15c   : > { %v621_v47 = vpop.permute.xlu0 %620  ;;  %v611_v14 = vpop.permute.xlu1 %610 }
 0x15d   : > { %v656_v10 = vadd.f32 %v621_v47, %v558_v45  ;;  %v628_v0 = vsel %vm622_vm3, %v611_v14, %v613_v37 }
 0x15e   : > { %v651_v16 = vadd.f32 %v628_v0, %v553_v33  ;;  %1102 = vrot.lane.b32.xlu1 %v1064_v7, %s1358_s5 }
 0x160   : > { %v697_v58 = vpop.permute.xlu0 %696  ;;  %v615_v17 = vpop.permute.xlu1 %614 }
 0x161   : > { %v629_v21 = vsel %vm622_vm3, %v613_v37, %v615_v17  ;;  %v630_v23 = vsel %vm622_vm3, %v615_v17, %v617_v49 }
 0x162   : > { %v652_v52 = vadd.f32 %v629_v21, %v1784_v1  ;;  %v653_v54 = vadd.f32 %v630_v23, %v555_v41  ;;  %1106 = vrot.lane.b32.xlu1 %v1066_v22, %s1358_s5 }
 0x164   : > { %v703_v59 = vpop.permute.xlu0 %702  ;;  %v619_v48 = vpop.permute.xlu1 %618 }
 0x165   : > { %v631_v2 = vsel %vm622_vm3, %v617_v49, %v619_v48  ;;  %v632_v24 = vsel %vm622_vm3, %v619_v48, %v621_v47 }
 0x166   : > { %v654_v20 = vadd.f32 %v631_v2, %v556_v39  ;;  %v655_v26 = vadd.f32 %v632_v24, %v557_v51 }
 0x168   : > { %v707_v15 = vpop.permute.xlu0 %706  ;;  %v699_v60 = vpop.permute.xlu1 %698 }
 0x169   : > { %v1837_v27 = vadd.f32 %v707_v15, %v650_v11  ;;  %v721_v28 = vsel %vm720_vm4, %v697_v58, %v699_v60 }
 0x16a   : > { %v1840_v33 = vadd.f32 %v721_v28, %v645_v57 }
 0x16c   : > { %v711_v1 = vpop.permute.xlu0 %710  ;;  %v701_v29 = vpop.permute.xlu1 %700 }
 0x16d   : > { %v722_v35 = vsel %vm720_vm4, %v699_v60, %v701_v29  ;;  %v723_v36 = vsel %vm720_vm4, %v701_v29, %v703_v59 }
 0x16e   : > { %v1844_v3 = vadd.f32 %v722_v35, %v646_v6  ;;  %v1846_v30 = vadd.f32 %v723_v36, %v647_v8 }
 0x170   : > { %v715_v34 = vpop.permute.xlu0 %714  ;;  %v705_v38 = vpop.permute.xlu1 %704 }
 0x171   : > { %v724_v41 = vsel %vm720_vm4, %v703_v59, %v705_v38  ;;  %v725_v39 = vsel %vm720_vm4, %v705_v38, %v707_v15 }
 0x172   : > { %v1850_v40 = vadd.f32 %v724_v41, %v648_v44  ;;  %v1852_v42 = vadd.f32 %v725_v39, %v649_v25 }
 0x174   : > { %v719_v46 = vpop.permute.xlu0 %718  ;;  %v709_v50 = vpop.permute.xlu1 %708 }
 0x175   : > { %v1854_v43 = vadd.f32 %v719_v46, %v656_v10  ;;  %v726_v45 = vsel %vm720_vm4, %v709_v50, %v711_v1 }
 0x176   : > { %v1857_v51 = vadd.f32 %v726_v45, %v651_v16 }
 0x178   : > { %v713_v18 = vpop.permute.xlu1 %712  ;;  %v869_v53 = vpop.permute.xlu0 %868 }
 0x179   : > { %v727_v55 = vsel %vm720_vm4, %v711_v1, %v713_v18  ;;  %v728_v61 = vsel %vm720_vm4, %v713_v18, %v715_v34 }
 0x17a   : > { %v1861_v11 = vadd.f32 %v727_v55, %v652_v52  ;;  %v1863_v56 = vadd.f32 %v728_v61, %v653_v54 }
 0x17c   : > { %v717_v57 = vpop.permute.xlu1 %716  ;;  %v873_v62 = vpop.permute.xlu0 %872 }
 0x17d   : > { %v729_v37 = vsel %vm720_vm4, %v715_v34, %v717_v57  ;;  %v730_v19 = vsel %vm720_vm4, %v717_v57, %v719_v46 }
 0x17e   : > { %v1867_v31 = vadd.f32 %v729_v37, %v654_v20  ;;  %v1869_v4 = vadd.f32 %v730_v19, %v655_v26 }
 0x180   : > { %v867_v5 = vpop.permute.xlu1 %866  ;;  %v877_v6 = vpop.permute.xlu0 %876 }
 0x181   : > { %v895_v20 = vsel %vm894_vm5, %v867_v5, %v869_v53 }
 0x182   : > { %v919_v28 = vadd.f32 %v895_v20, %v1840_v33 }
 0x184   : > { %v871_v8 = vpop.permute.xlu1 %870  ;;  %v1871_v49 = vpop.permute.xlu0 %880 }
 0x185   : > { %v896_v1 = vsel %vm894_vm5, %v869_v53, %v871_v8  ;;  %v897_v29 = vsel %vm894_vm5, %v871_v8, %v873_v62 }
 0x186   : > { %v920_v50 = vadd.f32 %v896_v1, %v1844_v3  ;;  %v921_v33 = vadd.f32 %v897_v29, %v1846_v30 }
 0x188   : > { %v875_v9 = vpop.permute.xlu1 %874  ;;  %v1873_v32 = vpop.permute.xlu0 %884 }
 0x189   : > { %v898_v35 = vsel %vm894_vm5, %v873_v62, %v875_v9  ;;  %v899_v18 = vsel %vm894_vm5, %v875_v9, %v877_v6 }
 0x18a   : > { %v922_v53 = vadd.f32 %v898_v35, %v1850_v40  ;;  %v923_v40 = vadd.f32 %v899_v18, %v1852_v42 }
 0x18c   : > { %v879_v63 = vpop.permute.xlu1 %878  ;;  %v1875_v13 = vpop.permute.xlu0 %888 }
 0x18d   : > { %v900_v55 = vsel %vm894_vm5, %v877_v6, %v879_v63 }
 0x190   : > { %v1877_v12 = vpop.permute.xlu1 %882  ;;  %v1879_v44 = vpop.permute.xlu0 %892 }
 0x191   : > { %v901_v42 = vsel %vm894_vm5, %v1871_v49, %v1877_v12 }
 0x194   : > { %v1881_v25 = vpop.permute.xlu1 %886 }
 0x198   : > { %v1885_v14 = vpop.permute.xlu1 %890 }
 0x1a1   : > { %v1883_v47 = vpop.permute.xlu0 %1156 }
 0x1a5   : > { %v977_v7 = vpop.permute.xlu0 %976 }
 0x1a9   : > { %v981_v10 = vpop.permute.xlu0 %980  ;;  %v1887_v0 = vpop.permute.xlu1 %1151 }
 0x1ad   : > { %v985_v16 = vpop.permute.xlu0 %984  ;;  %v975_v58 = vpop.permute.xlu1 %974 }
 0x1ae   : > { %v1003_v60 = vsel %vm1002_vm6, %v975_v58, %v977_v7 }
 0x1af   : > { %v1027_v36 = vadd.f32 %v1003_v60, %v919_v28 }
 0x1b1   : > { %v1889_v17 = vpop.permute.xlu0 %988  ;;  %v979_v22 = vpop.permute.xlu1 %978 }
 0x1b2   : > { %v1004_v41 = vsel %vm1002_vm6, %v977_v7, %v979_v22  ;;  %v1005_v39 = vsel %vm1002_vm6, %v979_v22, %v981_v10  ;;  %v924_v7 = vadd.f32 %v900_v55, %v1837_v27 }
 0x1b3   : > { %v1028_v61 = vadd.f32 %v1004_v41, %v920_v50  ;;  %v1029_v57 = vadd.f32 %v1005_v39, %v921_v33  ;;  %v925_v39 = vadd.f32 %v901_v42, %v1857_v51  ;;  %v904_v51 = vsel %vm894_vm5, %v1881_v25, %v1875_v13 }
 0x1b5   : > { %v1891_v21 = vpop.permute.xlu0 %992  ;;  %v983_v23 = vpop.permute.xlu1 %982 }
 0x1b6   : > { %v1006_v62 = vsel %vm1002_vm6, %v981_v10, %v983_v23  ;;  %v1007_v5 = vsel %vm1002_vm6, %v983_v23, %v985_v16 }
 0x1b7   : > { %v1030_v10 = vadd.f32 %v1006_v62, %v922_v53  ;;  %v1031_v58 = vadd.f32 %v1007_v5, %v923_v40 }
 0x1b9   : > { %v1893_v52 = vpop.permute.xlu0 %996  ;;  %v987_v54 = vpop.permute.xlu1 %986 }
 0x1ba   : > { %v1008_v20 = vsel %vm1002_vm6, %v985_v16, %v987_v54 }
 0x1bb   : > { %v1032_v41 = vadd.f32 %v1008_v20, %v924_v7 }
 0x1bd   : > { %v1895_v59 = vpop.permute.xlu0 %1000  ;;  %v1897_v48 = vpop.permute.xlu1 %990 }
 0x1c1   : > { %v1085_v2 = vpop.permute.xlu0 %1084  ;;  %v1899_v24 = vpop.permute.xlu1 %994 }
 0x1c5   : > { %v1089_v26 = vpop.permute.xlu0 %1088  ;;  %v1902_v15 = vpop.permute.xlu1 %998 }
 0x1c9   : > { %v1093_v34 = vpop.permute.xlu0 %1092  ;;  %v1083_v38 = vpop.permute.xlu1 %1082 }
 0x1ca   : > { %v1111_v46 = vsel %vm1110_vm7, %v1083_v38, %v1085_v2  ;;  %v903_v38 = vsel %vm894_vm5, %v1873_v32, %v1881_v25 }
 0x1cb   : > { %v1135_v45 = vadd.f32 %v1111_v46, %v1027_v36  ;;  %v902_v36 = vsel %vm894_vm5, %v1877_v12, %v1873_v32  ;;  %v1009_v12 = vsel %vm1002_vm6, %v1889_v17, %v1897_v48  ;;  %v1010_v32 = vsel %vm1002_vm6, %v1897_v48, %v1891_v21 }
 0x1cc   : > { %v926_v50 = vadd.f32 %v902_v36, %v1861_v11  ;;  %v927_v53 = vadd.f32 %v903_v38, %v1863_v56  ;;  %v905_v17 = vsel %vm894_vm5, %v1875_v13, %v1885_v14  ;;  %v906_v48 = vsel %vm894_vm5, %v1885_v14, %v1879_v44 }
 0x1cd   : > { %v1159_v37 = vadd.f32 %v1887_v0, %v1135_v45  ;;  %v1087_v19 = vpop.permute.xlu1 %1086  ;;  %v1097_v8 = vpop.permute.xlu0 %1096  ;;  %v1011_v56 = vsel %vm1002_vm6, %v1891_v21, %v1899_v24  ;;  %v1012_v13 = vsel %vm1002_vm6, %v1899_v24, %v1893_v52  ;;  %v928_v14 = vadd.f32 %v904_v51, %v1867_v31 }
 0x1ce   : > { %v1112_v3 = vsel %vm1110_vm7, %v1085_v2, %v1087_v19  ;;  %v1113_v30 = vsel %vm1110_vm7, %v1087_v19, %v1089_v26  ;;  %v1034_v11 = vadd.f32 %v1010_v32, %v926_v50  ;;  %v930_v5 = vadd.f32 %v906_v48, %v1854_v43 }
 0x1cf   : > { %v1171_v6 = vmax.f32 %v1159_v37, 0.0  ;;  %v1136_v9 = vadd.f32 %v1112_v3, %v1028_v61  ;;  %v1137_v63 = vadd.f32 %v1113_v30, %v1029_v57  ;;  %v1035_v3 = vadd.f32 %v1011_v56, %v927_v53 }
 0x1d0   : > { %v1036_v21 = vadd.f32 %v1012_v13, %v928_v14  ;;  %v1013_v31 = vsel %vm1002_vm6, %v1893_v52, %v1902_v15 }
 0x1d1   : > { %1183 = vst [vmem:[%s1924_s8] sm:$0xff] %v1171_v6  ;;  %v1160_v22 = vadd.f32 %v1887_v0, %v1136_v9  ;;  %v1161_v23 = vadd.f32 %v1887_v0, %v1137_v63  ;;  %v1091_v2 = vpop.permute.xlu1 %1090  ;;  %v1101_v49 = vpop.permute.xlu0 %1100 }
 0x1d2   : > { %v1114_v60 = vsel %vm1110_vm7, %v1089_v26, %v1091_v2  ;;  %v1115_v27 = vsel %vm1110_vm7, %v1091_v2, %v1093_v34 }
 0x1d3   : > { %v1172_v28 = vmax.f32 %v1160_v22, 0.0  ;;  %v1173_v1 = vmax.f32 %v1161_v23, 0.0  ;;  %v1138_v29 = vadd.f32 %v1114_v60, %v1030_v10  ;;  %v1139_v35 = vadd.f32 %v1115_v27, %v1031_v58 }
 0x1d5   : > { %1184 = vst [vmem:[%s1924_s8 + $0x8] sm:$0xff] %v1172_v28  ;;  %1185 = vst [vmem:[%s1924_s8 + $0x10] sm:$0xff] %v1173_v1  ;;  %v1162_v16 = vadd.f32 %v1887_v0, %v1138_v29  ;;  %v1163_v54 = vadd.f32 %v1887_v0, %v1139_v35  ;;  %v1095_v26 = vpop.permute.xlu1 %1094  ;;  %v1105_v57 = vpop.permute.xlu0 %1104 }
 0x1d6   : > { %v1116_v46 = vsel %vm1110_vm7, %v1093_v34, %v1095_v26  ;;  %v1033_v34 = vadd.f32 %v1009_v12, %v925_v39 }
 0x1d7   : > { %v1174_v33 = vmax.f32 %v1162_v16, 0.0  ;;  %v1175_v45 = vmax.f32 %v1163_v54, 0.0  ;;  %v1140_v18 = vadd.f32 %v1116_v46, %v1032_v41 }
 0x1d9   : > { %1186 = vst [vmem:[%s1924_s8 + $0x18] sm:$0xff] %v1174_v33  ;;  %1187 = vst [vmem:[%s1924_s8 + $0x20] sm:$0xff] %v1175_v45  ;;  %v1164_v55 = vadd.f32 %v1887_v0, %v1140_v18  ;;  %v1099_v61 = vpop.permute.xlu1 %1098  ;;  %v929_v0 = vadd.f32 %v905_v17, %v1869_v4  ;;  %v1014_v4 = vsel %vm1002_vm6, %v1902_v15, %v1895_v59  ;;  %v1109_v22 = vpop.permute.xlu0 %1108 }
 0x1da   : > { %v1117_v25 = vsel %vm1110_vm7, %v1097_v8, %v1099_v61  ;;  %v1118_v44 = vsel %vm1110_vm7, %v1099_v61, %v1101_v49  ;;  %v1038_v58 = vadd.f32 %v1014_v4, %v930_v5 }
 0x1db   : > { %v1176_v37 = vmax.f32 %v1164_v55, 0.0  ;;  %v1141_v19 = vadd.f32 %v1117_v25, %v1033_v34  ;;  %v1142_v62 = vadd.f32 %v1118_v44, %v1034_v11  ;;  %v1037_v10 = vadd.f32 %v1013_v31, %v929_v0 }
 0x1dd   : > { %1189 = vst.msk [vmem:[%s1924_s8 + $0x28] sm:$0xff] %vm1188_vm8, %v1176_v37  ;;  %v1165_v24 = vadd.f32 %v1883_v47, %v1141_v19  ;;  %v1166_v30 = vadd.f32 %v1883_v47, %v1142_v62  ;;  %v1103_v40 = vpop.permute.xlu1 %1102 }
 0x1de   : > { %v1119_v43 = vsel %vm1110_vm7, %v1101_v49, %v1103_v40  ;;  %v1120_v6 = vsel %vm1110_vm7, %v1103_v40, %v1105_v57 }
 0x1df   : > { %v1177_v8 = vmax.f32 %v1165_v24, 0.0  ;;  %v1178_v9 = vmax.f32 %v1166_v30, 0.0  ;;  %v1143_v63 = vadd.f32 %v1119_v43, %v1035_v3  ;;  %v1144_v7 = vadd.f32 %v1120_v6, %v1036_v21 }
 0x1e1   : > { %1190 = vst [vmem:[%s1924_s8 + $0x30] sm:$0xf] %v1177_v8  ;;  %1191 = vst [vmem:[%s1924_s8 + $0x38] sm:$0xf] %v1178_v9  ;;  %v1167_v52 = vadd.f32 %v1883_v47, %v1143_v63  ;;  %v1168_v59 = vadd.f32 %v1883_v47, %v1144_v7  ;;  %v1107_v15 = vpop.permute.xlu1 %1106 }
 0x1e2   : > { %v1121_v23 = vsel %vm1110_vm7, %v1105_v57, %v1107_v15  ;;  %v1122_v2 = vsel %vm1110_vm7, %v1107_v15, %v1109_v22 }
 0x1e3   : > { %v1179_v42 = vmax.f32 %v1167_v52, 0.0  ;;  %v1180_v20 = vmax.f32 %v1168_v59, 0.0  ;;  %v1145_v60 = vadd.f32 %v1121_v23, %v1037_v10  ;;  %v1146_v27 = vadd.f32 %v1122_v2, %v1038_v58 }
 0x1e5   : > { %1192 = vst [vmem:[%s1924_s8 + $0x40] sm:$0xf] %v1179_v42  ;;  %1193 = vst [vmem:[%s1924_s8 + $0x48] sm:$0xf] %v1180_v20  ;;  %v1169_v28 = vadd.f32 %v1883_v47, %v1145_v60  ;;  %v1170_v1 = vadd.f32 %v1883_v47, %v1146_v27 }
 0x1e7   : > { %v1181_v29 = vmax.f32 %v1169_v28, 0.0  ;;  %v1182_v35 = vmax.f32 %v1170_v1, 0.0 }
 0x1e9   : > { %1194 = vst [vmem:[%s1924_s8 + $0x50] sm:$0xf] %v1181_v29  ;;  %1196 = vst.msk [vmem:[%s1924_s8 + $0x58] sm:$0xf] %vm1195_vm9, %v1182_v35 }
 0x1ea PF: > { %s13_s12 = sadd.s32 1, %s1348_s12  }
 0x1eb   : > { %p10_p4 = scmp.ge.s32.totalorder %s13_s12, 4  }
 0x1ed   :  { %12 = sbr.rel (!%p10_p4) target bundleno = 1 (0x1), region = 70 }

// kernel: classifier_forward.5
= control target key start
LH: loop header
LB: loop body
LE: loop exit
PB: predicated region body
PF: predicated region fallthrough
CT: control target
= control target key end

     0   :  { %s2224_s12 = smov 0   ;;  %s2539_s0 = inlined_call_operand.vmem [shape: bf16[2,12,730], index: 0, kind: input, shape index: {}]   ;;  %s2540_s1 = inlined_call_operand.vmem [shape: bf16[9,12,12], index: 1, kind: input, shape index: {}]   ;;  %s2541_s2 = inlined_call_operand.vmem [shape: f32[12,1], index: 2, kind: input, shape index: {}]   ;;  %s2542_s3 = inlined_call_operand.vmem [shape: f32[2,12,672], index: 3, kind: output, shape index: {}]  }
   0x1 LB: > { %s1958_s13 = sadd.s32 4294967295, %s2193_s12   ;;  %p1962_p0 = scmp.ge.s32.totalorder %s2193_s12, 1  ;;  %s2193_s12 = sphi %s2224_s12, %s13_s12  }
   0x2   : > { %p137_p1 = scmp.lt.s32.totalorder %s2193_s12, 3 }
   0x4   : > { %p138_p2 = pnand %p1962_p0, %p137_p1 }
   0x5   : > { %p161_p3 = scmp.lt.s32.totalorder (!%p138_p2), %s1958_s13, 1  ;;  %v2195_v0 = vmov (!%p138_p2), 0   ;;  %s2196_s18 = smov (!%p138_p2), 127   ;;  %vm224_vm0 = vcmask (!%p138_p2), 1039360   ;;  %v1853_v9 = vld [vmem:[%s2541_s2] sm:$0xff] (!%p138_p2)  ;;  %vm234_vm1 = vcmask (!%p138_p2), 1045504  }
   0x6   : > { %141 = sbr.rel (%p138_p2) target bundleno = 483 (0x1e3), region = 32  ;;  %285 = vmatprep.mubr.bf16.mxu1 (!%p138_p2), %v2195_v0  ;;  %616 = vmatprep.mubr.bf16.mxu0 (!%p138_p2), %v2195_v0  ;;  %s2197_s19 = smov (!%p138_p2), 126   ;;  %v1854_v10 = vld [vmem:[%s2541_s2 + $0x8] sm:$0xf] (!%p138_p2)  ;;  %vm230_vm2 = vcmask (!%p138_p2), 97280   ;;  %vm557_vm3 = vcmask (!%p138_p2), 1031168  }
   0x7   : > { %2167 = vset.pattern.permute.xlu0 (!%p138_p2), %v2195_v0  ;;  %2168 = vset.pattern.permute.xlu1 (!%p138_p2), %v2195_v0  ;;  %s2198_s20 = smov (!%p138_p2), 100   ;;  %s2199_s21 = smov (!%p138_p2), 99   ;;  %v2178_v16 = vld [vmem:[%s2540_s1 + $0x8] sm:$0x3f] (!%p138_p2)   ;;  %v2331_v27 = vld [vmem:[%s2540_s1 + $0x10] sm:$0x3f] (!%p138_p2)  }
   0x8   : > { %s2200_s22 = smov (!%p138_p2), 98   ;;  %s2201_s23 = smov (!%p138_p2), 72   ;;  %vm745_vm4 = vcmask (!%p138_p2), 818176   ;;  %v2180_v45 = vld [vmem:[%s2540_s1] sm:$0x3f] (!%p138_p2)   ;;  %vm933_vm5 = vcmask (!%p138_p2), 809984  }
   0x9   : > { %s2202_s24 = smov (!%p138_p2), 71   ;;  %s2203_s25 = smov (!%p138_p2), 70   ;;  %v2369_v46 = vld [vmem:[%s2540_s1 + $0x18] sm:$0x3f] (!%p138_p2)   ;;  %v2403_v63 = vld [vmem:[%s2540_s1 + $0x20] sm:$0x3f] (!%p138_p2)  }
   0xa   : > { %vm1121_vm6 = vcmask (!%p138_p2), 801792   ;;  %vm1309_vm7 = vcmask (!%p138_p2), 588800   ;;  %vm1497_vm8 = vcmask (!%p138_p2), 580608   ;;  %vm1685_vm9 = vcmask (!%p138_p2), 572416  }
   0xb   : > { %vm1894_vm10 = vcmask (!%p138_p2), 261120   ;;  %vm1901_vm11 = vcmask (!%p138_p2), 257024  }
   0xd   : > { %s2544_s13 = smov (!%p161_p3, %s1958_s13), 1 }
   0xe   : > { %s2148_s14 = smul.u32 48, %s2544_s13 }
  0x10   : > { %s165_s17 = scalar_lea.vmem %s2539_s0, %s2148_s14 }
  0x11   : > { %v2242_v1 = vld [vmem:[%s165_s17 + $0x8] ss:$24 sps:$4 sm:$0x3f]   ;;  %v2247_v3 = vld [vmem:[%s165_s17 + $0xc] ss:$24 sps:$4 sm:$0x3f]  }
  0x12   : > { %v2244_v2 = vld [vmem:[%s165_s17] ss:$24 sps:$4 sm:$0x3f]   ;;  %216 = vrot.lane.b32.xlu1 %v2242_v1, %s2196_s18  ;;  %v2250_v4 = vld [vmem:[%s165_s17 + $0x4] ss:$24 sps:$4 sm:$0x3f]  }
  0x13   : > { %212 = vrot.lane.b32.xlu0 %v2244_v2, %s2196_s18  ;;  %v2254_v5 = vld [vmem:[%s165_s17 + $0x10] ss:$24 sps:$4 sm:$0x3f]   ;;  %v2260_v6 = vld [vmem:[%s165_s17 + $0x14] ss:$24 sps:$4 sm:$0x3f]  }
  0x14   : > { %v391_v38 = vsel %vm234_vm1, %v2244_v2, 0  ;;  %v397_v50 = vsel %vm234_vm1, %v2242_v1, 0  ;;  %v403_v58 = vsel %vm234_vm1, %v2254_v5, 0 }
  0x16   : > { %218 = vrot.lane.b32.xlu1 %v2247_v3, %s2196_s18 }
  0x17   : > { %214 = vrot.lane.b32.xlu0 %v2250_v4, %s2196_s18 }
  0x1a   : > { %545 = vrot.lane.b32.xlu1 %v2244_v2, %s2197_s19 }
  0x1b   : > { %220 = vrot.lane.b32.xlu0 %v2254_v5, %s2196_s18 }
  0x1e   : > { %549 = vrot.lane.b32.xlu1 %v2242_v1, %s2197_s19 }
  0x1f   : > { %547 = vrot.lane.b32.xlu0 %v2250_v4, %s2197_s19 }
  0x22   : > { %553 = vrot.lane.b32.xlu1 %v2254_v5, %s2197_s19 }
  0x23   : > { %222 = vrot.lane.b32.xlu0 %v2260_v6, %s2196_s18 }
  0x26   : > { %733 = vrot.lane.b32.xlu1 %v2244_v2, %s2198_s20 }
  0x27   : > { %555 = vrot.lane.b32.xlu0 %v2260_v6, %s2197_s19 }
  0x2a   : > { %737 = vrot.lane.b32.xlu1 %v2242_v1, %s2198_s20 }
  0x2b   : > { %735 = vrot.lane.b32.xlu0 %v2250_v4, %s2198_s20 }
  0x2e   : > { %743 = vrot.lane.b32.xlu1 %v2260_v6, %s2198_s20 }
  0x2f   : > { %741 = vrot.lane.b32.xlu0 %v2254_v5, %s2198_s20 }
  0x32   : > { %923 = vrot.lane.b32.xlu1 %v2250_v4, %s2199_s21 }
  0x33   : > { %921 = vrot.lane.b32.xlu0 %v2244_v2, %s2199_s21 }
  0x36   : > { %551 = vrot.lane.b32.xlu1 %v2247_v3, %s2197_s19 }
  0x37   : > { %925 = vrot.lane.b32.xlu0 %v2242_v1, %s2199_s21 }
  0x3a   : > { %931 = vrot.lane.b32.xlu1 %v2260_v6, %s2199_s21 }
  0x3b   : > { %929 = vrot.lane.b32.xlu0 %v2254_v5, %s2199_s21 }
  0x3e   : > { %1109 = vrot.lane.b32.xlu1 %v2244_v2, %s2200_s22 }
  0x3f   : > { %739 = vrot.lane.b32.xlu0 %v2247_v3, %s2198_s20 }
  0x42   : > { %1113 = vrot.lane.b32.xlu1 %v2242_v1, %s2200_s22 }
  0x43   : > { %1111 = vrot.lane.b32.xlu0 %v2250_v4, %s2200_s22 }
  0x46   : > { %1119 = vrot.lane.b32.xlu1 %v2260_v6, %s2200_s22 }
  0x47   : > { %1117 = vrot.lane.b32.xlu0 %v2254_v5, %s2200_s22 }
  0x4a   : > { %1297 = vrot.lane.b32.xlu1 %v2244_v2, %s2201_s23 }
  0x4b   : > { %927 = vrot.lane.b32.xlu0 %v2247_v3, %s2199_s21 }
  0x4e   : > { %1301 = vrot.lane.b32.xlu1 %v2242_v1, %s2201_s23 }
  0x4f   : > { %1299 = vrot.lane.b32.xlu0 %v2250_v4, %s2201_s23 }
  0x52   : > { %1305 = vrot.lane.b32.xlu1 %v2254_v5, %s2201_s23 }
  0x53   : > { %1115 = vrot.lane.b32.xlu0 %v2247_v3, %s2200_s22 }
  0x56   : > { %1485 = vrot.lane.b32.xlu1 %v2244_v2, %s2202_s24 }
  0x57   : > { %1307 = vrot.lane.b32.xlu0 %v2260_v6, %s2201_s23 }
  0x5a   : > { %1489 = vrot.lane.b32.xlu1 %v2242_v1, %s2202_s24 }
  0x5b   : > { %1487 = vrot.lane.b32.xlu0 %v2250_v4, %s2202_s24 }
  0x5e   : > { %1493 = vrot.lane.b32.xlu1 %v2254_v5, %s2202_s24 }
  0x5f   : > { %1303 = vrot.lane.b32.xlu0 %v2247_v3, %s2201_s23  ;;  %s2149_s23 = smul.u32 96, %s2544_s13 }
  0x61   : > { %s2522_s26 = scalar_lea.vmem %s2542_s3, %s2149_s23 }
  0x62   : > { %1491 = vrot.lane.b32.xlu1 %v2247_v3, %s2202_s24 }
  0x63   : > { %1495 = vrot.lane.b32.xlu0 %v2260_v6, %s2202_s24 }
  0x66   : > { %1675 = vrot.lane.b32.xlu1 %v2250_v4, %s2203_s25 }
  0x67   : > { %1673 = vrot.lane.b32.xlu0 %v2244_v2, %s2203_s25 }
  0x6a   : > { %1681 = vrot.lane.b32.xlu1 %v2254_v5, %s2203_s25 }
  0x6b   : > { %1677 = vrot.lane.b32.xlu0 %v2242_v1, %s2203_s25 }
  0x6e   : > { %1679 = vrot.lane.b32.xlu1 %v2247_v3, %s2203_s25 }
  0x6f   : > { %1683 = vrot.lane.b32.xlu0 %v2260_v6, %s2203_s25 }
  0x72   : > { %1862 = vperm.xlu1 %2168, %v1854_v10  }
  0x73   : > { %1857 = vperm.xlu0 %2167, %v1853_v9  }
  0x84   : > { %v217_v7 = vpop.permute.xlu1 %216 }
  0x85   : > { %v213_v8 = vpop.permute.xlu0 %212 }
  0x88   : > { %v219_v11 = vpop.permute.xlu1 %218 }
  0x89   : > { %v215_v12 = vpop.permute.xlu0 %214  ;;  %v227_v17 = vsel %vm224_vm0, %v217_v7, %v219_v11 }
  0x8a   : > { %v226_v13 = vsel %vm224_vm0, %v215_v12, %v217_v7  ;;  %v225_v14 = vsel %vm224_vm0, %v213_v8, %v215_v12  ;;  %v242_v21 = vsel %vm234_vm1, %v227_v17, 0 }
  0x8b   : > { %1974 = vmatprep.subr.msk.bf16.mxu1 %vm234_vm1, %v226_v13  ;;  %v236_v15 = vsel %vm234_vm1, %v225_v14, 0 }
  0x8c   : > { %254 = vmatpush1.bf16.msra.mxu1 %v236_v15  ;;  %v546_v18 = vpop.permute.xlu1 %545 }
  0x8d   : > { %v221_v19 = vpop.permute.xlu0 %220 }
  0x8e   : > { %v228_v20 = vsel %vm224_vm0, %v219_v11, %v221_v19 }
  0x8f   : > { %1975 = vmatmul.mubr.msk.bf16.vlgmr.msra.gmra.mrb[0].mxu1 %vm230_vm2, %v2178_v16  ;;  %1976 = vmatprep.subr.msk.bf16.mxu1 %vm234_vm1, %v228_v20  ;;  %v2183_v20 = vld [vmem:[%s2540_s1 + $0x28] sm:$0x3f]  }
  0x90   : > { %297 = vmatpush1.bf16.msra.mxu1 %v242_v21  ;;  %v2320_v22 = vpop.permute.xlu1 %549  ;;  %328 = vmatprep.mubr.bf16.mxu1 %v2195_v0 }
  0x91   : > { %v548_v23 = vpop.permute.xlu0 %547 }
  0x92   : > { %v559_v24 = vsel %vm557_vm3, %v548_v23, %v2320_v22  ;;  %v558_v25 = vsel %vm557_vm3, %v546_v18, %v548_v23 }
  0x93   : > { %1990 = vmatprep.subr.msk.bf16.mxu0 %vm234_vm1, %v559_v24  ;;  %v567_v26 = vsel %vm234_vm1, %v558_v25, 0 }
  0x94   : > { %585 = vmatpush1.bf16.msra.mxu0 %v567_v26  ;;  %v554_v28 = vpop.permute.xlu1 %553 }
  0x95   : > { %v223_v29 = vpop.permute.xlu0 %222 }
  0x96   : > { %v229_v30 = vsel %vm224_vm0, %v221_v19, %v223_v29  ;;  %1978 = vmatprep.subr.msk.bf16.mxu1 %vm234_vm1, %v223_v29 }
  0x97   : > { %v248_v31 = vsel %vm234_vm1, %v229_v30, 0  ;;  %1977 = vmatmul.mubr.msk.bf16.vlgmr.msra.gmra.mrb[4].mxu1 %vm230_vm2, %v2178_v16  ;;  %1991 = vmatmul.mubr.msk.bf16.vlgmr.msra.gmra.mrb[0].mxu0 %vm230_vm2, %v2331_v27 }
  0x98   : > { %340 = vmatpush1.bf16.msra.mxu1 %v248_v31  ;;  %v734_v32 = vpop.permute.xlu1 %733  ;;  %371 = vmatprep.mubr.bf16.mxu1 %v2195_v0 }
  0x99   : > { %v556_v33 = vpop.permute.xlu0 %555  ;;  %702 = vmatprep.mubr.bf16.mxu0 %v2195_v0  ;;  %1981 = vmatprep.subr.msk.bf16.mxu1 %vm234_vm1, %v2250_v4 }
  0x9a   : > { %v562_v34 = vsel %vm557_vm3, %v554_v28, %v556_v33  ;;  %1994 = vmatprep.subr.msk.bf16.mxu0 %vm234_vm1, %v556_v33 }
  0x9b   : > { %v579_v35 = vsel %vm234_vm1, %v562_v34, 0 }
  0x9c   : > { %671 = vmatpush1.bf16.msra.mxu0 %v579_v35  ;;  %v2346_v36 = vpop.permute.xlu1 %737 }
  0x9d   : > { %v736_v37 = vpop.permute.xlu0 %735 }
  0x9e   : > { %v746_v39 = vsel %vm745_vm4, %v734_v32, %v736_v37  ;;  %v747_v40 = vsel %vm745_vm4, %v736_v37, %v2346_v36 }
  0x9f   : > { %v755_v41 = vsel %vm234_vm1, %v746_v39, 0  ;;  %1979 = vmatmul.mubr.msk.bf16.vlgmr.msra.gmra.mrb[8].mxu1 %vm230_vm2, %v2178_v16  ;;  %1995 = vmatmul.mubr.msk.bf16.vlgmr.msra.gmra.mrb[4].mxu0 %vm230_vm2, %v2331_v27 }
  0xa0   : > { %409 = vmatpush1.bf16.msra.mxu1 %v391_v38  ;;  %v744_v42 = vpop.permute.xlu1 %743  ;;  %1999 = vmatprep.subr.msk.bf16.mxu0 %vm234_vm1, %v747_v40 }
  0xa1   : > { %v742_v43 = vpop.permute.xlu0 %741  ;;  %773 = vmatpush1.bf16.msra.mxu0 %v755_v41  ;;  %440 = vmatprep.mubr.bf16.mxu1 %v2195_v0 }
  0xa2   : > { %v750_v44 = vsel %vm745_vm4, %v742_v43, %v744_v42  ;;  %804 = vmatprep.mubr.bf16.mxu0 %v2195_v0  ;;  %1983 = vmatprep.subr.msk.bf16.mxu1 %vm234_vm1, %v2247_v3 }
  0xa3   : > { %2003 = vmatprep.subr.msk.bf16.mxu0 %vm234_vm1, %v744_v42  ;;  %v767_v48 = vsel %vm234_vm1, %v750_v44, 0 }
  0xa4   : > { %v924_v47 = vpop.permute.xlu1 %923 }
  0xa5   : > { %v922_v49 = vpop.permute.xlu0 %921 }
  0xa6   : > { %v934_v53 = vsel %vm933_vm5, %v922_v49, %v924_v47 }
  0xa7   : > { %1982 = vmatmul.mubr.msk.bf16.vlgmr.msra.gmra.mrb[0].mxu1 %vm230_vm2, %v2180_v45  ;;  %2000 = vmatmul.mubr.msk.bf16.vlgmr.msra.gmra.mrb[0].mxu0 %vm230_vm2, %v2369_v46  ;;  %v943_v56 = vsel %vm234_vm1, %v934_v53, 0  ;;  %v2185_v53 = vld [vmem:[%s2540_s1 + $0x38] sm:$0x3f]  }
  0xa8   : > { %452 = vmatpush1.bf16.msra.mxu1 %v397_v50  ;;  %v552_v51 = vpop.permute.xlu1 %551  ;;  %859 = vmatpush1.bf16.msra.mxu0 %v767_v48 }
  0xa9   : > { %v2378_v52 = vpop.permute.xlu0 %925  ;;  %483 = vmatprep.mubr.bf16.mxu1 %v2195_v0  ;;  %1985 = vmatprep.subr.msk.bf16.mxu1 %vm234_vm1, %v2260_v6  ;;  %v561_v59 = vsel %vm557_vm3, %v552_v51, %v554_v28  ;;  %v560_v1 = vsel %vm557_vm3, %v2320_v22, %v552_v51 }
  0xaa   : > { %v935_v54 = vsel %vm933_vm5, %v924_v47, %v2378_v52  ;;  %890 = vmatprep.mubr.bf16.mxu0 %v2195_v0  ;;  %v573_v5 = vsel %vm234_vm1, %v560_v1, 0 }
  0xab   : > { %2008 = vmatprep.subr.msk.bf16.mxu0 %vm234_vm1, %v935_v54 }
  0xac   : > { %v932_v55 = vpop.permute.xlu1 %931 }
  0xad   : > { %v930_v57 = vpop.permute.xlu0 %929 }
  0xae   : > { %v938_v62 = vsel %vm933_vm5, %v930_v57, %v932_v55 }
  0xaf   : > { %1984 = vmatmul.mubr.msk.bf16.vlgmr.msra.gmra.mrb[4].mxu1 %vm230_vm2, %v2180_v45  ;;  %2004 = vmatmul.mubr.msk.bf16.vlgmr.msra.gmra.mrb[4].mxu0 %vm230_vm2, %v2369_v46  ;;  %v955_v4 = vsel %vm234_vm1, %v938_v62, 0 }
  0xb0   : > { %495 = vmatpush1.bf16.msra.mxu1 %v403_v58  ;;  %961 = vmatpush1.bf16.msra.mxu0 %v943_v56  ;;  %v1110_v60 = vpop.permute.xlu1 %1109 }
  0xb1   : > { %1992 = vmatprep.subr.msk.bf16.mxu1 %vm234_vm1, %v561_v59  ;;  %v740_v61 = vpop.permute.xlu0 %739  ;;  %526 = vmatprep.mubr.bf16.mxu1 %v2195_v0 }
  0xb2   : > { %992 = vmatprep.mubr.bf16.mxu0 %v2195_v0  ;;  %2012 = vmatprep.subr.msk.bf16.mxu0 %vm234_vm1, %v932_v55  ;;  %v749_v7 = vsel %vm745_vm4, %v740_v61, %v742_v43  ;;  %v748_v11 = vsel %vm745_vm4, %v2346_v36, %v740_v61  ;;  %v2184_v36 = vld [vmem:[%s2540_s1 + $0x30] sm:$0x3f]  }
  0xb3   : > { %v761_v16 = vsel %vm234_vm1, %v748_v11, 0 }
  0xb4   : > { %v2407_v2 = vpop.permute.xlu1 %1113 }
  0xb5   : > { %v1112_v3 = vpop.permute.xlu0 %1111 }
  0xb6   : > { %v1123_v6 = vsel %vm1121_vm6, %v1112_v3, %v2407_v2  ;;  %v1122_v10 = vsel %vm1121_vm6, %v1110_v60, %v1112_v3  ;;  %v2186_v3 = vld [vmem:[%s2540_s1 + $0x40] sm:$0x3f]  }
  0xb7   : > { %1986 = vmatmul.mubr.msk.bf16.vlgmr.msra.gmra.mrb[8].mxu1 %vm230_vm2, %v2180_v45  ;;  %2009 = vmatmul.mubr.msk.bf16.vlgmr.msra.gmra.mrb[0].mxu0 %vm230_vm2, %v2403_v63  ;;  %v1131_v13 = vsel %vm234_vm1, %v1122_v10, 0 }
  0xb8   : > { %628 = vmatpush1.bf16.msra.mxu1 %v573_v5  ;;  %1047 = vmatpush1.bf16.msra.mxu0 %v955_v4  ;;  %v1120_v8 = vpop.permute.xlu1 %1119 }
  0xb9   : > { %2001 = vmatprep.subr.msk.bf16.mxu1 %vm234_vm1, %v749_v7  ;;  %v1118_v9 = vpop.permute.xlu0 %1117  ;;  %659 = vmatprep.mubr.bf16.mxu1 %v2195_v0 }
  0xba   : > { %1078 = vmatprep.mubr.bf16.mxu0 %v2195_v0  ;;  %2017 = vmatprep.subr.msk.bf16.mxu0 %vm234_vm1, %v1123_v6  ;;  %v1126_v19 = vsel %vm1121_vm6, %v1118_v9, %v1120_v8 }
  0xbb   : > { %v1143_v22 = vsel %vm234_vm1, %v1126_v19, 0 }
  0xbc   : > { %v1298_v12 = vpop.permute.xlu1 %1297 }
  0xbd   : > { %v928_v14 = vpop.permute.xlu0 %927 }
  0xbe   : > { %v937_v15 = vsel %vm933_vm5, %v928_v14, %v930_v57  ;;  %v936_v25 = vsel %vm933_vm5, %v2378_v52, %v928_v14 }
  0xbf   : > { %1993 = vmatmul.mubr.msk.bf16.vlgmr.msra.gmra.mrb[4].mxu1 %vm230_vm2, %v2331_v27  ;;  %2013 = vmatmul.mubr.msk.bf16.vlgmr.msra.gmra.mrb[4].mxu0 %vm230_vm2, %v2403_v63  ;;  %v949_v30 = vsel %vm234_vm1, %v936_v25, 0 }
  0xc0   : > { %816 = vmatpush1.bf16.msra.mxu1 %v761_v16  ;;  %1149 = vmatpush1.bf16.msra.mxu0 %v1131_v13  ;;  %v1302_v17 = vpop.permute.xlu1 %1301 }
  0xc1   : > { %2010 = vmatprep.subr.msk.bf16.mxu1 %vm234_vm1, %v937_v15  ;;  %v1300_v18 = vpop.permute.xlu0 %1299  ;;  %1180 = vmatprep.mubr.bf16.mxu0 %v2195_v0 }
  0xc2   : > { %2021 = vmatprep.subr.msk.bf16.mxu0 %vm234_vm1, %v1120_v8  ;;  %847 = vmatprep.mubr.bf16.mxu1 %v2195_v0  ;;  %v1311_v24 = vsel %vm1309_vm7, %v1300_v18, %v1302_v17  ;;  %v1310_v29 = vsel %vm1309_vm7, %v1298_v12, %v1300_v18 }
  0xc3   : > { %v1319_v31 = vsel %vm234_vm1, %v1310_v29, 0 }
  0xc4   : > { %v1306_v21 = vpop.permute.xlu1 %1305 }
  0xc5   : > { %v1116_v23 = vpop.permute.xlu0 %1115 }
  0xc6   : > { %v1125_v28 = vsel %vm1121_vm6, %v1116_v23, %v1118_v9  ;;  %v1124_v37 = vsel %vm1121_vm6, %v2407_v2, %v1116_v23 }
  0xc7   : > { %2018 = vmatmul.mubr.msk.bf16.vlgmr.msra.gmra.mrb[0].mxu0 %vm230_vm2, %v2183_v20  ;;  %v1137_v41 = vsel %vm234_vm1, %v1124_v37, 0 }
  0xc8   : > { %1235 = vmatpush1.bf16.msra.mxu0 %v1143_v22  ;;  %1266 = vmatprep.mubr.bf16.mxu0 %v2195_v0  ;;  %v1486_v27 = vpop.permute.xlu1 %1485 }
  0xc9   : > { %v1308_v26 = vpop.permute.xlu0 %1307  ;;  %2026 = vmatprep.subr.msk.bf16.mxu0 %vm234_vm1, %v1311_v24 }
  0xca   : > { %v1314_v34 = vsel %vm1309_vm7, %v1306_v21, %v1308_v26 }
  0xcb   : > { %2002 = vmatmul.mubr.msk.bf16.vlgmr.msra.gmra.mrb[4].mxu1 %vm230_vm2, %v2369_v46  ;;  %v1331_v38 = vsel %vm234_vm1, %v1314_v34, 0 }
  0xcc   : > { %1004 = vmatpush1.bf16.msra.mxu1 %v949_v30  ;;  %1035 = vmatprep.mubr.bf16.mxu1 %v2195_v0  ;;  %v1490_v33 = vpop.permute.xlu1 %1489 }
  0xcd   : > { %2019 = vmatprep.subr.msk.bf16.mxu1 %vm234_vm1, %v1125_v28  ;;  %v1488_v32 = vpop.permute.xlu0 %1487 }
  0xce   : > { %v1499_v42 = vsel %vm1497_vm8, %v1488_v32, %v1490_v33  ;;  %v1498_v44 = vsel %vm1497_vm8, %v1486_v27, %v1488_v32 }
  0xcf   : > { %2022 = vmatmul.mubr.msk.bf16.vlgmr.msra.gmra.mrb[4].mxu0 %vm230_vm2, %v2183_v20  ;;  %v1507_v46 = vsel %vm234_vm1, %v1498_v44, 0 }
  0xd0   : > { %1337 = vmatpush1.bf16.msra.mxu0 %v1319_v31  ;;  %1368 = vmatprep.mubr.bf16.mxu0 %v2195_v0  ;;  %v1494_v39 = vpop.permute.xlu1 %1493 }
  0xd1   : > { %2030 = vmatprep.subr.msk.bf16.mxu0 %vm234_vm1, %v1308_v26  ;;  %v1304_v35 = vpop.permute.xlu0 %1303 }
  0xd2   : > { %v1313_v40 = vsel %vm1309_vm7, %v1304_v35, %v1306_v21  ;;  %v1312_v49 = vsel %vm1309_vm7, %v1302_v17, %v1304_v35 }
  0xd3   : > { %v1325_v52 = vsel %vm234_vm1, %v1312_v49, 0 }
  0xd4   : > { %v1492_v45 = vpop.permute.xlu1 %1491 }
  0xd5   : > { %v1496_v43 = vpop.permute.xlu0 %1495  ;;  %v1501_v50 = vsel %vm1497_vm8, %v1492_v45, %v1494_v39  ;;  %v1500_v60 = vsel %vm1497_vm8, %v1490_v33, %v1492_v45 }
  0xd6   : > { %v1502_v51 = vsel %vm1497_vm8, %v1494_v39, %v1496_v43 }
  0xd7   : > { %2011 = vmatmul.mubr.msk.bf16.vlgmr.msra.gmra.mrb[4].mxu1 %vm230_vm2, %v2403_v63  ;;  %2027 = vmatmul.mubr.msk.bf16.vlgmr.msra.gmra.mrb[0].mxu0 %vm230_vm2, %v2184_v36  ;;  %v1519_v55 = vsel %vm234_vm1, %v1502_v51, 0  ;;  %v1513_v63 = vsel %vm234_vm1, %v1500_v60, 0 }
  0xd8   : > { %1192 = vmatpush1.bf16.msra.mxu1 %v1137_v41  ;;  %1423 = vmatpush1.bf16.msra.mxu0 %v1331_v38  ;;  %v1676_v48 = vpop.permute.xlu1 %1675 }
  0xd9   : > { %2028 = vmatprep.subr.msk.bf16.mxu1 %vm234_vm1, %v1313_v40  ;;  %1454 = vmatprep.mubr.bf16.mxu0 %v2195_v0  ;;  %v1674_v47 = vpop.permute.xlu0 %1673 }
  0xda   : > { %2035 = vmatprep.subr.msk.bf16.mxu0 %vm234_vm1, %v1499_v42  ;;  %1223 = vmatprep.mubr.bf16.mxu1 %v2195_v0  ;;  %v1686_v58 = vsel %vm1685_vm9, %v1674_v47, %v1676_v48 }
  0xdb   : > { %v1695_v61 = vsel %vm234_vm1, %v1686_v58, 0 }
  0xdc   : > { %v1682_v56 = vpop.permute.xlu1 %1681 }
  0xdd   : > { %v1678_v54 = vpop.permute.xlu0 %1677 }
  0xde   : > { %v1687_v57 = vsel %vm1685_vm9, %v1676_v48, %v1678_v54 }
  0xdf   : > { %2031 = vmatmul.mubr.msk.bf16.vlgmr.msra.gmra.mrb[4].mxu0 %vm230_vm2, %v2184_v36 }
  0xe0   : > { %1525 = vmatpush1.bf16.msra.mxu0 %v1507_v46  ;;  %1556 = vmatprep.mubr.bf16.mxu0 %v2195_v0  ;;  %v1680_v59 = vpop.permute.xlu1 %1679 }
  0xe1   : > { %2039 = vmatprep.subr.msk.bf16.mxu0 %vm234_vm1, %v1496_v43  ;;  %v1689_v62 = vsel %vm1685_vm9, %v1680_v59, %v1682_v56  ;;  %v1684_v1 = vpop.permute.xlu0 %1683  ;;  %v1688_v5 = vsel %vm1685_vm9, %v1678_v54, %v1680_v59 }
  0xe2   : > { %v1690_v2 = vsel %vm1685_vm9, %v1682_v56, %v1684_v1  ;;  %v1701_v6 = vsel %vm234_vm1, %v1688_v5, 0 }
  0xe3   : > { %2020 = vmatmul.mubr.msk.bf16.vlgmr.msra.gmra.mrb[4].mxu1 %vm230_vm2, %v2183_v20  ;;  %v1707_v4 = vsel %vm234_vm1, %v1690_v2, 0 }
  0xe4   : > { %1380 = vmatpush1.bf16.msra.mxu1 %v1325_v52  ;;  %1411 = vmatprep.mubr.bf16.mxu1 %v2195_v0 }
  0xe5   : > { %2037 = vmatprep.subr.msk.bf16.mxu1 %vm234_vm1, %v1501_v50 }
  0xe7   : > { %2036 = vmatmul.mubr.msk.bf16.vlgmr.msra.gmra.mrb[0].mxu0 %vm230_vm2, %v2185_v53 }
  0xe8   : > { %1611 = vmatpush1.bf16.msra.mxu0 %v1519_v55  ;;  %1642 = vmatprep.mubr.bf16.mxu0 %v2195_v0 }
  0xe9   : > { %2044 = vmatprep.subr.msk.bf16.mxu0 %vm234_vm1, %v1687_v57 }
  0xef   : > { %2040 = vmatmul.mubr.msk.bf16.vlgmr.msra.gmra.mrb[4].mxu0 %vm230_vm2, %v2185_v53  ;;  %2029 = vmatmul.mubr.msk.bf16.vlgmr.msra.gmra.mrb[4].mxu1 %vm230_vm2, %v2184_v36 }
  0xf0   : > { %1568 = vmatpush1.bf16.msra.mxu1 %v1513_v63  ;;  %1713 = vmatpush1.bf16.msra.mxu0 %v1695_v61 }
  0xf1   : > { %1744 = vmatprep.mubr.bf16.mxu0 %v2195_v0  ;;  %2046 = vmatprep.subr.msk.bf16.mxu1 %vm234_vm1, %v1689_v62 }
  0xf2   : > { %2048 = vmatprep.subr.msk.bf16.mxu0 %vm234_vm1, %v1684_v1  ;;  %1599 = vmatprep.mubr.bf16.mxu1 %v2195_v0  ;;  %v1858_v16 = vpop.permute.xlu0 %1857 }
  0xf7   : > { %2045 = vmatmul.mubr.msk.bf16.vlgmr.msra.gmra.mrb[0].mxu0 %vm230_vm2, %v2186_v3 }
  0xf8   : > { %1799 = vmatpush1.bf16.msra.mxu0 %v1707_v4  ;;  %1830 = vmatprep.mubr.bf16.mxu0 %v2195_v0 }
  0xfb   : > { %2038 = vmatmul.mubr.msk.bf16.vlgmr.msra.gmra.mrb[4].mxu1 %vm230_vm2, %v2185_v53 }
  0xfc   : > { %1756 = vmatpush1.bf16.msra.mxu1 %v1701_v6  ;;  %1787 = vmatprep.mubr.bf16.mxu1 %v2195_v0  ;;  %v1863_v0 = vpop.permute.xlu1 %1862 }
  0xff   : > { %2049 = vmatmul.mubr.msk.bf16.vlgmr.msra.gmra.mrb[4].mxu0 %vm230_vm2, %v2186_v3 }
 0x107   : > { %2047 = vmatmul.mubr.msk.bf16.vlgmr.msra.gmra.mrb[4].mxu1 %vm230_vm2, %v2186_v3 }
 0x17a   : > { %v442_v7 = vpop.f32.mrb[0].mxu1 }
 0x17b   : > { %v444_v8 = vpop.f32.mrb[1].mxu1 }
 0x17c   : > { %v446_v9 = vpop.f32.mrb[2].mxu1 }
 0x17d   : > { %v448_v10 = vpop.f32.mrb[3].mxu1 }
 0x18a   : > { %v528_v11 = vpop.f32.mrb[8].mxu1 }
 0x18b   : > { %v530_v12 = vpop.f32.mrb[9].mxu1 }
 0x18c   : > { %v532_v13 = vpop.f32.mrb[10].mxu1 }
 0x18d   : > { %v534_v14 = vpop.f32.mrb[11].mxu1 }
 0x1ca   : > { %v1746_v15 = vpop.f32.mrb[0].mxu0 }
 0x1cb   : > { %v2052_v17 = vadd.f32 %v1746_v15, %v442_v7  ;;  %v1748_v18 = vpop.f32.mrb[1].mxu0 }
 0x1cc   : > { %v2053_v19 = vadd.f32 %v1748_v18, %v444_v8  ;;  %v1750_v20 = vpop.f32.mrb[2].mxu0 }
 0x1cd   : > { %v2054_v21 = vadd.f32 %v1750_v20, %v446_v9  ;;  %v1865_v22 = vadd.f32 %v2052_v17, %v1858_v16  ;;  %v1752_v23 = vpop.f32.mrb[3].mxu0 }
 0x1ce   : > { %v1866_v24 = vadd.f32 %v2053_v19, %v1858_v16  ;;  %v2055_v25 = vadd.f32 %v1752_v23, %v448_v10 }
 0x1cf   : > { %v1877_v26 = vmax.f32 %v1865_v22, 0.0  ;;  %v1871_v27 = vadd.f32 %v2054_v21, %v1863_v0 }
 0x1d0   : > { %v1878_v28 = vmax.f32 %v1866_v24, 0.0  ;;  %v1872_v29 = vadd.f32 %v2055_v25, %v1863_v0 }
 0x1d1   : > { %1889 = vst [vmem:[%s2522_s26] sm:$0xff] %v1877_v26  ;;  %v1883_v30 = vmax.f32 %v1871_v27, 0.0 }
 0x1d2   : > { %1890 = vst [vmem:[%s2522_s26 + $0x8] sm:$0xff] %v1878_v28  ;;  %v1884_v31 = vmax.f32 %v1872_v29, 0.0  ;;  %v1832_v32 = vpop.f32.mrb[4].mxu0 }
 0x1d3   : > { %1896 = vst [vmem:[%s2522_s26 + $0x30] sm:$0xf] %v1883_v30  ;;  %v2056_v33 = vadd.f32 %v1832_v32, %v528_v11  ;;  %v1834_v34 = vpop.f32.mrb[5].mxu0 }
 0x1d4   : > { %1897 = vst [vmem:[%s2522_s26 + $0x38] sm:$0xf] %v1884_v31  ;;  %v2057_v35 = vadd.f32 %v1834_v34, %v530_v12  ;;  %v1836_v36 = vpop.f32.mrb[6].mxu0 }
 0x1d5   : > { %v1869_v37 = vadd.f32 %v2056_v33, %v1858_v16  ;;  %v2058_v38 = vadd.f32 %v1836_v36, %v532_v13  ;;  %v1838_v39 = vpop.f32.mrb[7].mxu0 }
 0x1d6   : > { %v1870_v40 = vadd.f32 %v2057_v35, %v1858_v16  ;;  %v2059_v41 = vadd.f32 %v1838_v39, %v534_v14 }
 0x1d7   : > { %v1881_v42 = vmax.f32 %v1869_v37, 0.0  ;;  %v1875_v43 = vadd.f32 %v2058_v38, %v1863_v0 }
 0x1d8   : > { %v1882_v44 = vmax.f32 %v1870_v40, 0.0  ;;  %v1876_v45 = vadd.f32 %v2059_v41, %v1863_v0 }
 0x1d9   : > { %1893 = vst [vmem:[%s2522_s26 + $0x20] sm:$0xff] %v1881_v42  ;;  %v1887_v46 = vmax.f32 %v1875_v43, 0.0 }
 0x1da   : > { %1895 = vst.msk [vmem:[%s2522_s26 + $0x28] sm:$0xff] %vm1894_vm10, %v1882_v44  ;;  %v1888_v47 = vmax.f32 %v1876_v45, 0.0  ;;  %v1789_v48 = vpop.f32.mrb[4].mxu1 }
 0x1db   : > { %1900 = vst [vmem:[%s2522_s26 + $0x50] sm:$0xf] %v1887_v46  ;;  %v1867_v49 = vadd.f32 %v1858_v16, %v1789_v48  ;;  %v1791_v50 = vpop.f32.mrb[5].mxu1 }
 0x1dc   : > { %1902 = vst.msk [vmem:[%s2522_s26 + $0x58] sm:$0xf] %vm1901_vm11, %v1888_v47  ;;  %v1868_v51 = vadd.f32 %v1858_v16, %v1791_v50  ;;  %v1793_v52 = vpop.f32.mrb[6].mxu1 }
 0x1dd   : > { %v1879_v53 = vmax.f32 %v1867_v49, 0.0  ;;  %v1873_v54 = vadd.f32 %v1863_v0, %v1793_v52  ;;  %v1795_v55 = vpop.f32.mrb[7].mxu1 }
 0x1de   : > { %v1880_v56 = vmax.f32 %v1868_v51, 0.0  ;;  %v1874_v57 = vadd.f32 %v1863_v0, %v1795_v55 }
 0x1df   : > { %1891 = vst [vmem:[%s2522_s26 + $0x10] sm:$0xff] %v1879_v53  ;;  %v1885_v58 = vmax.f32 %v1873_v54, 0.0 }
 0x1e0   : > { %1892 = vst [vmem:[%s2522_s26 + $0x18] sm:$0xff] %v1880_v56  ;;  %v1886_v59 = vmax.f32 %v1874_v57, 0.0 }
 0x1e1   : > { %1898 = vst [vmem:[%s2522_s26 + $0x40] sm:$0xf] %v1885_v58 }
 0x1e2   : > { %1899 = vst [vmem:[%s2522_s26 + $0x48] sm:$0xf] %v1886_v59 }
 0x1e3 PF: > { %s13_s12 = sadd.s32 1, %s2193_s12  }
 0x1e4   : > { %p10_p4 = scmp.ge.s32.totalorder %s13_s12, 4  }
 0x1e6   :  { %12 = sbr.rel (!%p10_p4) target bundleno = 1 (0x1), region = 70 }

// kernel: classifier_forward.6
= control target key start
LH: loop header
LB: loop body
LE: loop exit
PB: predicated region body
PF: predicated region fallthrough
CT: control target
= control target key end

     0   :  { %s1159_s12 = smov 0   ;;  %s1279_s0 = inlined_call_operand.vmem [shape: bf16[2,12,66], index: 0, kind: input, shape index: {}]   ;;  %s1280_s1 = inlined_call_operand.vmem [shape: bf16[9,24,12], index: 1, kind: input, shape index: {}]   ;;  %s1281_s2 = inlined_call_operand.vmem [shape: f32[24,1], index: 2, kind: input, shape index: {}]   ;;  %s1282_s3 = inlined_call_operand.vmem [shape: f32[2,24,48], index: 3, kind: output, shape index: {}]  }
   0x1 LB: > { %s921_s13 = sadd.s32 4294967295, %s1128_s12   ;;  %p925_p0 = scmp.ge.s32.totalorder %s1128_s12, 1  ;;  %s1128_s12 = sphi %s1159_s12, %s13_s12  }
   0x2   : > { %p137_p1 = scmp.lt.s32.totalorder %s1128_s12, 3 }
   0x4   : > { %p138_p2 = pnand %p925_p0, %p137_p1 }
   0x5   : > { %p161_p3 = scmp.lt.s32.totalorder (!%p138_p2), %s921_s13, 1  ;;  %v1104_v0 = vld [vmem:[%s1280_s1 + $0xc] sm:$0xff] (!%p138_p2)   ;;  %vm196_vm0 = vcmask (!%p138_p2), 97280   ;;  %v1105_v1 = vld [vmem:[%s1280_s1] sm:$0xff] (!%p138_p2)   ;;  %vm203_vm1 = vcmask (!%p138_p2), 1045504   ;;  %s1130_s22 = smov (!%p138_p2), 127  }
   0x6   : > { %141 = sbr.rel (%p138_p2) target bundleno = 390 (0x186), region = 32  ;;  %1022 = vmatprep.mubr.msk.bf16.mxu0 (!%p138_p2), %vm196_vm0, %v1104_v0  ;;  %1028 = vmatprep.mubr.msk.bf16.mxu1 (!%p138_p2), %vm196_vm0, %v1105_v1  ;;  %s1131_s23 = smov (!%p138_p2), 120   ;;  %v1107_v4 = vld [vmem:[%s1280_s1 + $0x8] ss:$0 sps:$4 sm:$0xff] (!%p138_p2)   ;;  %v838_v7 = vld [vmem:[%s1281_s2] sm:$0xff] (!%p138_p2)  ;;  %v1138_v8 = vmov (!%p138_p2), 0  }
   0x7   : > { %v1110_v5 = vld [vmem:[%s1280_s1 + $0x24] sm:$0xff] (!%p138_p2)   ;;  %s1132_s28 = smov (!%p138_p2), 126   ;;  %s1133_s29 = smov (!%p138_p2), 119   ;;  %1102 = vset.pattern.permute.xlu1 (!%p138_p2), %v1138_v8  ;;  %1101 = vset.pattern.permute.xlu0 (!%p138_p2), %v1138_v8  ;;  %v840_v9 = vld [vmem:[%s1281_s2 + $0x10] sm:$0xff] (!%p138_p2)  ;;  %v1108_v15 = vld [vmem:[%s1280_s1 + $0x18] sm:$0xff] (!%p138_p2)   ;;  %vm862_vm2 = vcmask (!%p138_p2), 392192  }
   0x8   : > { %s1134_s30 = smov (!%p138_p2), 118   ;;  %s1135_s4 = smov (!%p138_p2), 112   ;;  %v839_v6 = vld [vmem:[%s1281_s2 + $0x8] sm:$0xff] (!%p138_p2)  ;;  %v1106_v13 = vld [vmem:[%s1280_s1 + $0x14] ss:$0 sps:$4 sm:$0xff] (!%p138_p2)   ;;  %v1114_v19 = vld [vmem:[%s1280_s1 + $0x3c] sm:$0xff] (!%p138_p2)  }
   0x9   : > { %s1136_s5 = smov (!%p138_p2), 111   ;;  %s1137_s6 = smov (!%p138_p2), 110   ;;  %v1111_v16 = vld [vmem:[%s1280_s1 + $0x2c] ss:$0 sps:$4 sm:$0xff] (!%p138_p2)   ;;  %v1109_v22 = vld [vmem:[%s1280_s1 + $0x20] ss:$0 sps:$4 sm:$0xff] (!%p138_p2)  }
   0xa   : > { %v1112_v24 = vld [vmem:[%s1280_s1 + $0x30] sm:$0xff] (!%p138_p2)   ;;  %v1115_v26 = vld [vmem:[%s1280_s1 + $0x44] ss:$0 sps:$4 sm:$0xff] (!%p138_p2)   ;;  %v1113_v31 = vld [vmem:[%s1280_s1 + $0x38] ss:$0 sps:$4 sm:$0xff] (!%p138_p2)  }
   0xb   : > { %v1118_v29 = vld [vmem:[%s1280_s1 + $0x54] sm:$0xff] (!%p138_p2)   ;;  %v1116_v32 = vld [vmem:[%s1280_s1 + $0x48] sm:$0xff] (!%p138_p2)   ;;  %v1119_v34 = vld [vmem:[%s1280_s1 + $0x5c] ss:$0 sps:$4 sm:$0xff] (!%p138_p2)  }
   0xc   : > { %v1117_v36 = vld [vmem:[%s1280_s1 + $0x50] ss:$0 sps:$4 sm:$0xff] (!%p138_p2)   ;;  %v1120_v37 = vld [vmem:[%s1280_s1 + $0x60] sm:$0xff] (!%p138_p2)   ;;  %v1121_v39 = vld [vmem:[%s1280_s1 + $0x68] ss:$0 sps:$4 sm:$0xff] (!%p138_p2)  }
   0xd   : > { %s1284_s13 = smov (!%p161_p3, %s921_s13), 1 }
   0xe   : > { %s992_s18 = sshll.u32 %s1284_s13, 3 }
   0xf   : > { %s165_s21 = scalar_lea.vmem %s1279_s0, %s992_s18  ;;  %s1083_s18 = smul.u32 24, %s1284_s13 }
  0x10   : > { %v1103_v2 = vld [vmem:[%s165_s21] sm:$0x3f]  }
  0x11   : > { %194 = vrot.lane.b32.xlu0 %v1103_v2, %s1130_s22  ;;  %406 = vrot.lane.b32.xlu1 %v1103_v2, %s1131_s23  ;;  %v270_v3 = vsel %vm203_vm1, %v1103_v2, 0  ;;  %s170_s21 = scalar_lea.vmem %s1282_s3, %s1083_s18 }
  0x12   : > { %1075 = vmatprep.subr.msk.bf16.mxu1 %vm203_vm1, %v1103_v2 }
  0x13   : > { %1027 = vmatpush3.bf16.msra.mxu1 %v270_v3 }
  0x15   : > { %332 = vrot.lane.b32.xlu0 %v1103_v2, %s1132_s28  ;;  %480 = vrot.lane.b32.xlu1 %v1103_v2, %s1133_s29 }
  0x16   : > { %1029 = vmatmul.mubr.msk.bf16.vlgmr.msra.gmra.mrb[0].mxu1 %vm196_vm0, %v1107_v4 }
  0x17   : > { %1040 = vmatprep.mubr.msk.bf16.mxu1 %vm196_vm0, %v1110_v5 }
  0x19   : > { %554 = vrot.lane.b32.xlu0 %v1103_v2, %s1134_s30  ;;  %628 = vrot.lane.b32.xlu1 %v1103_v2, %s1135_s4 }
  0x1d   : > { %702 = vrot.lane.b32.xlu0 %v1103_v2, %s1136_s5  ;;  %776 = vrot.lane.b32.xlu1 %v1103_v2, %s1137_s6 }
  0x21   : > { %848 = vperm.xlu1 %1102, %v839_v6   ;;  %843 = vperm.xlu0 %1101, %v838_v7  }
  0x25   : > { %853 = vperm.xlu1 %1102, %v840_v9  }
  0x83   : > { %v195_v10 = vpop.permute.xlu0 %194  ;;  %v407_v11 = vpop.permute.xlu1 %406 }
  0x84   : > { %1074 = vmatprep.subr.msk.bf16.mxu0 %vm203_vm1, %v195_v10  ;;  %v205_v12 = vsel %vm203_vm1, %v195_v10, 0  ;;  %v415_v14 = vsel %vm203_vm1, %v407_v11, 0  ;;  %1077 = vmatprep.subr.msk.bf16.mxu1 %vm203_vm1, %v407_v11 }
  0x85   : > { %1021 = vmatpush3.bf16.msra.mxu0 %v205_v12  ;;  %1039 = vmatpush3.bf16.msra.mxu1 %v415_v14 }
  0x87   : > { %v333_v17 = vpop.permute.xlu0 %332  ;;  %v481_v18 = vpop.permute.xlu1 %480 }
  0x88   : > { %v341_v20 = vsel %vm203_vm1, %v333_v17, 0  ;;  %1023 = vmatmul.mubr.msk.bf16.vlgmr.msra.gmra.mrb[0].mxu0 %vm196_vm0, %v1106_v13  ;;  %1076 = vmatprep.subr.msk.bf16.mxu0 %vm203_vm1, %v333_v17  ;;  %v489_v25 = vsel %vm203_vm1, %v481_v18, 0 }
  0x89   : > { %1033 = vmatpush3.bf16.msra.mxu0 %v341_v20  ;;  %1034 = vmatprep.mubr.msk.bf16.mxu0 %vm196_vm0, %v1108_v15 }
  0x8a   : > { %1078 = vmatprep.subr.msk.bf16.mxu0 %vm203_vm1, %v481_v18  ;;  %1041 = vmatmul.mubr.msk.bf16.vlgmr.msra.gmra.mrb[4].mxu1 %vm196_vm0, %v1111_v16 }
  0x8b   : > { %v555_v21 = vpop.permute.xlu0 %554  ;;  %1052 = vmatprep.mubr.msk.bf16.mxu1 %vm196_vm0, %v1114_v19  ;;  %v629_v27 = vpop.permute.xlu1 %628 }
  0x8c   : > { %v563_v23 = vsel %vm203_vm1, %v555_v21, 0  ;;  %1079 = vmatprep.subr.msk.bf16.mxu1 %vm203_vm1, %v555_v21  ;;  %v637_v33 = vsel %vm203_vm1, %v629_v27, 0 }
  0x8d   : > { %1051 = vmatpush3.bf16.msra.mxu1 %v563_v23 }
  0x8f   : > { %v703_v28 = vpop.permute.xlu0 %702  ;;  %v777_v35 = vpop.permute.xlu1 %776 }
  0x90   : > { %1035 = vmatmul.mubr.msk.bf16.vlgmr.msra.gmra.mrb[4].mxu0 %vm196_vm0, %v1109_v22  ;;  %v711_v30 = vsel %vm203_vm1, %v703_v28, 0  ;;  %1081 = vmatprep.subr.msk.bf16.mxu1 %vm203_vm1, %v703_v28  ;;  %v785_v38 = vsel %vm203_vm1, %v777_v35, 0 }
  0x91   : > { %1045 = vmatpush3.bf16.msra.mxu0 %v489_v25  ;;  %1046 = vmatprep.mubr.msk.bf16.mxu0 %vm196_vm0, %v1112_v24 }
  0x92   : > { %1080 = vmatprep.subr.msk.bf16.mxu0 %vm203_vm1, %v629_v27  ;;  %1053 = vmatmul.mubr.msk.bf16.vlgmr.msra.gmra.mrb[8].mxu1 %vm196_vm0, %v1115_v26 }
  0x93   : > { %1063 = vmatpush3.bf16.msra.mxu1 %v711_v30  ;;  %1064 = vmatprep.mubr.msk.bf16.mxu1 %vm196_vm0, %v1118_v29 }
  0x98   : > { %1047 = vmatmul.mubr.msk.bf16.vlgmr.msra.gmra.mrb[8].mxu0 %vm196_vm0, %v1113_v31 }
  0x99   : > { %1057 = vmatpush3.bf16.msra.mxu0 %v637_v33  ;;  %1058 = vmatprep.mubr.msk.bf16.mxu0 %vm196_vm0, %v1116_v32 }
  0x9a   : > { %1082 = vmatprep.subr.msk.bf16.mxu0 %vm203_vm1, %v777_v35  ;;  %1065 = vmatmul.mubr.msk.bf16.vlgmr.msra.gmra.mrb[12].mxu1 %vm196_vm0, %v1119_v34 }
  0xa0   : > { %1059 = vmatmul.mubr.msk.bf16.vlgmr.msra.gmra.mrb[12].mxu0 %vm196_vm0, %v1117_v36  ;;  %v849_v24 = vpop.permute.xlu1 %848  ;;  %v844_v34 = vpop.permute.xlu0 %843 }
  0xa1   : > { %1069 = vmatpush3.bf16.msra.mxu0 %v785_v38  ;;  %1070 = vmatprep.mubr.msk.bf16.mxu0 %vm196_vm0, %v1120_v37 }
  0xa4   : > { %v854_v31 = vpop.permute.xlu1 %853 }
  0xa8   : > { %1071 = vmatmul.mubr.msk.bf16.vlgmr.msra.gmra.mrb[16].mxu0 %vm196_vm0, %v1121_v39 }
  0xe9   : > { %v1030_v40 = vpop.f32.mrb[0].mxu1 }
  0xea   : > { %v306_v41 = vpop.f32.mrb[1].mxu1 }
  0xeb   : > { %v1031_v42 = vpop.f32.mrb[2].mxu1 }
  0xec   : > { %v309_v43 = vpop.f32.mrb[3].mxu1 }
 0x15b   : > { %v1024_v44 = vpop.f32.mrb[0].mxu0 }
 0x15c   : > { %v315_v45 = vadd.f32 %v1030_v40, %v1024_v44  ;;  %v241_v46 = vpop.f32.mrb[1].mxu0 }
 0x15d   : > { %v307_v47 = vadd.f32 %v306_v41, %v241_v46  ;;  %v1025_v48 = vpop.f32.mrb[2].mxu0  ;;  %v1042_v49 = vpop.f32.mrb[4].mxu1 }
 0x15e   : > { %v244_v50 = vpop.f32.mrb[3].mxu0  ;;  %v451_v51 = vpop.f32.mrb[5].mxu1 }
 0x15f   : > { %v310_v52 = vadd.f32 %v309_v43, %v244_v50  ;;  %v1043_v53 = vpop.f32.mrb[6].mxu1 }
 0x160   : > { %v454_v54 = vpop.f32.mrb[7].mxu1 }
 0x163   : > { %v1036_v55 = vpop.f32.mrb[4].mxu0 }
 0x164   : > { %v393_v56 = vadd.f32 %v1036_v55, %v315_v45  ;;  %v377_v57 = vpop.f32.mrb[5].mxu0 }
 0x165   : > { %v391_v58 = vadd.f32 %v377_v57, %v307_v47  ;;  %v1037_v59 = vpop.f32.mrb[6].mxu0  ;;  %v1054_v60 = vpop.f32.mrb[8].mxu1 }
 0x166   : > { %v467_v61 = vadd.f32 %v1042_v49, %v393_v56  ;;  %v380_v62 = vpop.f32.mrb[7].mxu0  ;;  %v599_v63 = vpop.f32.mrb[9].mxu1 }
 0x167   : > { %v392_v0 = vadd.f32 %v380_v62, %v310_v52  ;;  %v465_v1 = vadd.f32 %v451_v51, %v391_v58  ;;  %v1055_v2 = vpop.f32.mrb[10].mxu1 }
 0x168   : > { %v602_v3 = vpop.f32.mrb[11].mxu1 }
 0x169   : > { %v466_v4 = vadd.f32 %v454_v54, %v392_v0 }
 0x16b   : > { %v1048_v5 = vpop.f32.mrb[8].mxu0 }
 0x16c   : > { %v541_v6 = vadd.f32 %v1048_v5, %v467_v61  ;;  %v525_v7 = vpop.f32.mrb[9].mxu0 }
 0x16d   : > { %v539_v8 = vadd.f32 %v525_v7, %v465_v1  ;;  %v1049_v9 = vpop.f32.mrb[10].mxu0  ;;  %v1066_v10 = vpop.f32.mrb[12].mxu1 }
 0x16e   : > { %v615_v11 = vadd.f32 %v1054_v60, %v541_v6  ;;  %v528_v12 = vpop.f32.mrb[11].mxu0  ;;  %v747_v13 = vpop.f32.mrb[13].mxu1 }
 0x16f   : > { %v540_v14 = vadd.f32 %v528_v12, %v466_v4  ;;  %v613_v15 = vadd.f32 %v599_v63, %v539_v8  ;;  %v1067_v16 = vpop.f32.mrb[14].mxu1 }
 0x170   : > { %v750_v17 = vpop.f32.mrb[15].mxu1 }
 0x171   : > { %v614_v18 = vadd.f32 %v602_v3, %v540_v14 }
 0x173   : > { %v1060_v19 = vpop.f32.mrb[12].mxu0 }
 0x174   : > { %v689_v20 = vadd.f32 %v1060_v19, %v615_v11  ;;  %v673_v21 = vpop.f32.mrb[13].mxu0 }
 0x175   : > { %v687_v22 = vadd.f32 %v673_v21, %v613_v15  ;;  %v1061_v23 = vpop.f32.mrb[14].mxu0 }
 0x176   : > { %v763_v25 = vadd.f32 %v1066_v10, %v689_v20  ;;  %v676_v26 = vpop.f32.mrb[15].mxu0 }
 0x177   : > { %v688_v27 = vadd.f32 %v676_v26, %v614_v18  ;;  %v761_v28 = vadd.f32 %v747_v13, %v687_v22 }
 0x179   : > { %v762_v29 = vadd.f32 %v750_v17, %v688_v27 }
 0x17b   : > { %v1072_v30 = vpop.f32.mrb[16].mxu0 }
 0x17c   : > { %v837_v32 = vadd.f32 %v1072_v30, %v763_v25  ;;  %v821_v33 = vpop.f32.mrb[17].mxu0 }
 0x17d   : > { %v835_v35 = vadd.f32 %v821_v33, %v761_v28  ;;  %v1073_v36 = vpop.f32.mrb[18].mxu0 }
 0x17e   : > { %v858_v37 = vadd.f32 %v854_v31, %v837_v32  ;;  %v824_v38 = vpop.f32.mrb[19].mxu0 }
 0x17f   : > { %v836_v39 = vadd.f32 %v824_v38, %v762_v29  ;;  %v856_v40 = vadd.f32 %v844_v34, %v835_v35 }
 0x180   : > { %v861_v41 = vmax.f32 %v858_v37, 0.0 }
 0x181   : > { %v857_v42 = vadd.f32 %v849_v24, %v836_v39  ;;  %v859_v43 = vmax.f32 %v856_v40, 0.0 }
 0x182   : > { %865 = vst.msk [vmem:[%s170_s21 + $0x10] sm:$0xff] %vm862_vm2, %v861_v41 }
 0x183   : > { %v860_v44 = vmax.f32 %v857_v42, 0.0  ;;  %863 = vst.msk [vmem:[%s170_s21] sm:$0xff] %vm862_vm2, %v859_v43 }
 0x185   : > { %864 = vst.msk [vmem:[%s170_s21 + $0x8] sm:$0xff] %vm862_vm2, %v860_v44 }
 0x186 PF: > { %s13_s12 = sadd.s32 1, %s1128_s12  }
 0x187   : > { %p10_p4 = scmp.ge.s32.totalorder %s13_s12, 4  }
 0x189   :  { %12 = sbr.rel (!%p10_p4) target bundleno = 1 (0x1), region = 70 }

// kernel: classifier_forward.7
= control target key start
LH: loop header
LB: loop body
LE: loop exit
PB: predicated region body
PF: predicated region fallthrough
CT: control target
= control target key end

     0   :  { %v348_v3 = vmov 0.0|0.0   ;;  %vm349_vm0 = vmmov 0   ;;  %v350_v6 = vmov 0.0   ;;  %s460_s0 = inlined_call_operand.vmem [shape: f32[2,96], index: 0, kind: input, shape index: {}]   ;;  %s461_s1 = inlined_call_operand.vmem [shape: f32[96,50], index: 1, kind: input, shape index: {}]   ;;  %s462_s2 = inlined_call_operand.vmem [shape: f32[1,50], index: 2, kind: input, shape index: {}]   ;;  %s463_s3 = inlined_call_operand.vmem [shape: f32[50,10], index: 3, kind: input, shape index: {}]   ;;  %s464_s4 = inlined_call_operand.vmem [shape: f32[1,10], index: 4, kind: input, shape index: {}]   ;;  %s465_s5 = inlined_call_operand.hbm [shape: f32[2,10], index: 5, kind: output, shape index: {}]  }
   0x1   :  { %v22_v0 = vld [vmem:[%s461_s1] sm:$0xff]  ;;  %v23_v1 = vld [vmem:[%s461_s1 + $0x8] sm:$0xff]  ;;  %v24_v2 = vld [vmem:[%s461_s1 + $0x10] sm:$0xff]  ;;  %293 = vmatprep.subr.bf16.mxu0 %v348_v3  ;;  %273 = vmatprep.mubr.msk.f32.mxu0 %vm349_vm0, %v350_v6 }
   0x2   :  { %v294_v4 = vpack.c.bf16 %v23_v1, %v22_v0  ;;  %v25_v5 = vld [vmem:[%s461_s1 + $0x18] sm:$0xff]  ;;  %311 = vmatprep.subr.bf16.mxu1 %v348_v3  ;;  %290 = vmatprep.mubr.msk.f32.mxu1 %vm349_vm0, %v350_v6  ;;  %v26_v8 = vld [vmem:[%s461_s1 + $0x20] sm:$0xff]  ;;  %v27_v9 = vld [vmem:[%s461_s1 + $0x28] sm:$0xff] }
   0x3   :  { %v297_v7 = vpack.c.bf16 %v25_v5, %v24_v2  ;;  %v115_v10 = vld [vmem:[%s463_s3] sm:$0xff]  ;;  %v116_v11 = vld [vmem:[%s463_s3 + $0x8] sm:$0xff]  ;;  %v117_v13 = vld [vmem:[%s463_s3 + $0x10] sm:$0xff] }
   0x4   :  { %295 = vmatpush3.bf16.msra.mxu0 %v294_v4  ;;  %v312_v12 = vpack.c.bf16 %v116_v11, %v115_v10  ;;  %v118_v14 = vld [vmem:[%s463_s3 + $0x18] sm:$0xff] }
   0x5   :  { %296 = vmatprep.subr.bf16.mxu0 %v348_v3 }
   0x6   :  { %10 = vsyncpa [#allocation3], 0  ;;  %v300_v15 = vpack.c.bf16 %v27_v9, %v26_v8  ;;  %v28_v16 = vld [vmem:[%s461_s1 + $0x30] sm:$0xff]  ;;  %313 = vmatpush3.bf16.msra.mxu1 %v312_v12  ;;  %v315_v17 = vpack.c.bf16 %v118_v14, %v117_v13  ;;  %v29_v18 = vld [vmem:[%s461_s1 + $0x38] sm:$0xff]  ;;  %vm41_vm1 = vcmask 785408   ;;  %vm133_vm2 = vcmask 1041408  }
   0x7   :  { %314 = vmatprep.subr.bf16.mxu1 %v348_v3  ;;  %v119_v19 = vld [vmem:[%s463_s3 + $0x20] sm:$0xff]  ;;  %v120_v20 = vld [vmem:[%s463_s3 + $0x28] sm:$0xff]  ;;  %v303_v21 = vpack.c.bf16 %v29_v18, %v28_v16  ;;  %v32_v26 = vld [vmem:[%s461_s1 + $0x50] sm:$0xff]  ;;  %vm129_vm3 = vcmask 408576   ;;  %vm207_vm4 = vcmask 74752  }
   0x8   :  { %298 = vmatpush3.bf16.msra.mxu0 %v297_v7  ;;  %v318_v22 = vpack.c.bf16 %v120_v20, %v119_v19  ;;  %v30_v23 = vld [vmem:[%s461_s1 + $0x40] sm:$0xff]  ;;  %v31_v24 = vld [vmem:[%s461_s1 + $0x48] sm:$0xff]  ;;  %v33_v27 = vld [vmem:[%s461_s1 + $0x58] sm:$0xff] }
   0x9   :  { %299 = vmatprep.subr.bf16.mxu0 %v348_v3  ;;  %v306_v25 = vpack.c.bf16 %v31_v24, %v30_v23  ;;  %v309_v28 = vpack.c.bf16 %v33_v27, %v32_v26  ;;  %v21_v29 = vld [vmem:[%s460_s0] sm:$0x3]  ;;  %v121_v30 = vld [vmem:[%s463_s3 + $0x30] sm:$0x3]  ;;  %s351_s0 = smov [#allocation2]  }
   0xa   :  { %316 = vmatpush3.bf16.msra.mxu1 %v315_v17  ;;  %v223_v31 = vld [vmem:[%s462_s2] ss:$0 sm:$0xff]  ;;  %s215_s11 = sshll.u32 %s351_s0, 4  ;;  %s216_s11 = int_to_ptr.vmem [resolvable:$true] %s215_s11 }
   0xb   :  { %317 = vmatprep.subr.bf16.mxu1 %v348_v3  ;;  %v225_v35 = vld [vmem:[%s464_s4] ss:$0 sm:$0xff]  ;;  %s324_s3 = scalar_lea.vmem %s216_s11, 32  ;;  %p329_p1 = scmp.lt.s32.totalorder %s216_s11, %s216_s11 }
   0xc   :  { %301 = vmatpush3.bf16.msra.mxu0 %v300_v15  ;;  %p325_p0 = scmp.ne.s32.totalorder %s216_s11, %s324_s3  ;;  %p330_p2 = scmp.lt.s32.totalorder %s324_s3, %s324_s3 }
   0xd   :  { %302 = vmatprep.subr.bf16.mxu0 %v348_v3 }
   0xe   :  { %319 = vmatpush3.bf16.msra.mxu1 %v318_v22  ;;  %p331_p3 = por %p330_p2, %p329_p1 }
   0xf   :  { %288 = vmatprep.subr.mxu1 %v350_v6 }
  0x10   :  { %304 = vmatpush3.bf16.msra.mxu0 %v303_v21  ;;  %p332_p4 = pnand %p331_p3, %p325_p0 }
  0x11   :  { %305 = vmatprep.subr.bf16.mxu0 %v348_v3 }
  0x12   :  { %289 = vmatpush3.msk.msra.mxu1 %vm133_vm2, %v121_v30 }
  0x14   :  { %307 = vmatpush3.bf16.msra.mxu0 %v306_v25 }
  0x15   :  { %308 = vmatprep.subr.bf16.mxu0 %v348_v3 }
  0x18   :  { %310 = vmatpush3.bf16.msra.mxu0 %v309_v28 }
  0x1b   :  { %274 = vmatmul.mubr.msk.f32.vlgmr.msra.gmra.mrb[0].mxu0 %vm41_vm1, %v21_v29 }
  0xee   :  { %v111_v32 = vpop.f32.mrb[0].mxu0 }
  0xef   :  { %v112_v33 = vadd.f32 %v223_v31, %v111_v32  ;;  %v275_v34 = vpop.f32.mrb[1].mxu0 }
  0xf1   :  { %291 = vmatmul.mubr.msk.f32.vlgmr.msra.gmra.mrb[0].mxu1 %vm129_vm3, %v112_v33 }
 0x1c4   :  { %v203_v36 = vpop.f32.mrb[0].mxu1 }
 0x1c5   :  { %v204_v37 = vadd.f32 %v225_v35, %v203_v36  ;;  %v292_v38 = vpop.f32.mrb[1].mxu1 }
 0x1c7   :  { %208 = vst.msk [vmem:[#allocation2] sm:$0x3] %vm207_vm4, %v204_v37 }
 0x1c8   :  { %335 = shalt.err (!%p332_p4)
}
 0x1c9   :  { %s336_s13 = scalar_lea.hbm %s465_s5, 32 }
 0x1ca   :  { %p337_p5 = scmp.ne.s32.totalorder %s465_s5, %s336_s13  ;;  %p340_p6 = scmp.lt.u32.totalorder %s336_s13, %s465_s5 }
 0x1cc   :  { %p342_p7 = pnand %p340_p6, %p337_p5 }
 0x1ce   :  { %345 = shalt.err (!%p342_p7)
}
 0x1cf   :  { %218 = dma.vmem_to_hbm [thread:$0]  %s216_s11, 32, %s465_s5, [#allocation3]  }
 0x1d0   :  { %346 = dma.done.wait [#allocation3], 32  }
 0x1d1   :  { %347 = vsyncadd [#allocation3], 4294967264 }
 0x1d2   :  { %222 = vsyncpa [#allocation3], 1 }

</bundles_post_ra>
